<compile_context>
chip_gen: v7x
topology: tpu7x:2x2x1
jax: 0.10.0
libtpu: 0.0.40
codegen_flags: <defaults>
</compile_context>

<pallas_src>
import functools

import jax
import jax.numpy as jnp
from jax.experimental import pallas as pl
from jax.experimental.pallas import tpu as pltpu

LANE = 128


# ---------------------------------------------------------------------------
# Fused kernel: 1x1 conv (VPU MAC) + ReLU + fc head (MXU, bf16 in / f32 acc),
# accumulated over the spatial grid axis into the (BN, O_pad) output block.
# ---------------------------------------------------------------------------
def _fused_kernel(conv_w_ref, conv_b_ref, fc_b_ref, x_ref, wr_ref, o_ref):
    # conv_w_ref : (C_bb, C_in)       SMEM f32 (PyTorch layout, scalar reads)
    # conv_b_ref : (C_bb,)            SMEM f32
    # fc_b_ref   : (1, O_pad)         VMEM f32
    # x_ref      : (C_in, BN, BP)     VMEM f32  (channel-leading input tile)
    # wr_ref     : (C_bb, BP, O_pad)  VMEM bf16 (fc weight, relayout + pad at prep time)
    # o_ref      : (BN, O_pad)        VMEM f32  (accumulator across the spatial grid axis)
    c_bb, c_in = conv_w_ref.shape
    pb = pl.program_id(1)

    @pl.when(pb == 0)
    def _init():
        o_ref[...] = jnp.zeros_like(o_ref)

    acc = jnp.zeros(o_ref.shape, jnp.float32)
    for c in range(c_bb):                      # static unroll: C_bb is small
        # 1x1-conv output channel c on the VPU: broadcast-MAC with SMEM scalar weights.
        # x_ref[ci] is re-loaded per use (free address offset on the leading dim), so no
        # channel slabs stay live in vregs across the whole unrolled loop.
        bb = x_ref[0] * conv_w_ref[c, 0]
        for ci in range(1, c_in):
            bb = bb + x_ref[ci] * conv_w_ref[c, ci]
        bb = jnp.maximum(bb + conv_b_ref[c], 0.0)            # bias + ReLU in f32 (VPU)
        # fc-head contribution of this channel: (BN, BP) @ (BP, O_pad) on the MXU.
        acc = acc + jnp.dot(bb.astype(jnp.bfloat16), wr_ref[c],
                            preferred_element_type=jnp.float32)

    o_ref[...] += acc

    @pl.when(pb == pl.num_programs(1) - 1)
    def _finalize():
        o_ref[...] += fc_b_ref[...]


# ---------------------------------------------------------------------------
# Tile / VMEM policy helpers.
# ---------------------------------------------------------------------------
def _pick_block(total, quantum, max_size):
    """Largest multiple of `quantum` that divides `total` and is <= max_size;
    falls back to `total` itself (full-extent block) if none exists."""
    best = None
    d = quantum
    limit = min(total, max_size)
    while d <= limit:
        if total % d == 0:
            best = d
        d += quantum
    return best if best is not None else total


def _vmem_capacity_bytes():
    """Per-core VMEM capacity; conservative default (v7x: 64 MiB/TC) if the query fails."""
    try:
        cap = getattr(pltpu.get_tpu_info(), "vmem_capacity_bytes", None)
        if cap:
            return int(cap)
    except Exception:
        pass
    return 64 * 1024 * 1024


# ---------------------------------------------------------------------------
# Wrapper: one pallas_call for the whole forward pass.
# ---------------------------------------------------------------------------
def my_model_forward(x_nchw, params, *, out_planes):
    n, c_in, h, w = x_nchw.shape
    p = h * w

    conv_w = params["conv_w"]        # (C_bb, C_in)      f32, PyTorch layout
    conv_b = params["conv_b"]        # (C_bb,)           f32
    wr = params["fc_w_cpo"]          # (C_bb, P, O_pad)  bf16, relayout + pad at prep time
    fc_b = params["fc_b2d"]          # (1, O_pad)        f32

    c_bb = conv_w.shape[0]
    o_pad = wr.shape[-1]
    assert wr.shape == (c_bb, p, o_pad), (wr.shape, (c_bb, p, o_pad))
    assert o_pad % LANE == 0 and out_planes <= o_pad

    # NCHW -> (C_in, N, P): channel-leading so each channel slab is a plain
    # (BN, BP) sublane x lane tile inside the kernel (one-time relayout by XLA).
    x_cf = jnp.transpose(x_nchw.reshape(n, c_in, p), (1, 0, 2))

    # ---- tile selection (chip-aware) ---------------------------------------
    cap = _vmem_capacity_bytes()
    tile_budget = int(cap * 0.6)                       # headroom for Mosaic internals
    vmem_limit = min(int(cap * 0.85), 100 * 1024 * 1024)

    # Batch tile: fill the MXU M rows (largest multiple-of-8 divisor of N, <= 256).
    bn = _pick_block(n, 8, 256)
    # If that leaves a single batch tile and N is large enough, split in two so both
    # v7x TensorCores get work on the "parallel" grid axis.
    if n // bn < 2 and bn >= 64 and bn % 16 == 0:
        bn //= 2

    # Spatial (reduction) tile: largest lane-dense divisor of P, shrunk until the
    # double-buffered working set fits the VMEM budget.
    bp = _pick_block(p, LANE, 2048)

    def _footprint(bp_):
        x_blk = c_in * bn * bp_ * 4                    # f32 input tile
        w_blk = c_bb * bp_ * o_pad * 2                 # bf16 fc-weight tile
        o_blk = bn * o_pad * 4                         # f32 output accumulator
        return 2 * (x_blk + w_blk) + 2 * o_blk + o_pad * 4

    while _footprint(bp) > tile_budget and bp % 256 == 0:
        bp //= 2                                       # stays a divisor of p, multiple of 128

    assert n % bn == 0 and p % bp == 0
    grid = (n // bn, p // bp)

    # ---- cost estimate (advisory) -------------------------------------------
    n_btiles = grid[0]
    flops = 2 * n * p * c_in * c_bb + 2 * n * p * c_bb * o_pad
    bytes_accessed = (
        4 * x_cf.size                              # input, read once
        + 2 * wr.size * n_btiles                   # bf16 fc weight, re-streamed per batch tile
        + 4 * (conv_w.size + conv_b.size)
        + 4 * fc_b.size * grid[0] * grid[1]
        + 4 * n * o_pad                            # output write-back
    )

    out_pad = pl.pallas_call(
        _fused_kernel,
        out_shape=jax.ShapeDtypeStruct((n, o_pad), jnp.float32),
        grid=grid,
        in_specs=[
            pl.BlockSpec(memory_space=pltpu.MemorySpace.SMEM),              # conv_w
            pl.BlockSpec(memory_space=pltpu.MemorySpace.SMEM),              # conv_b
            pl.BlockSpec((1, o_pad), lambda nb, pb: (0, 0)),                # fc bias
            pl.BlockSpec((c_in, bn, bp), lambda nb, pb: (0, nb, pb)),       # x
            pl.BlockSpec((c_bb, bp, o_pad), lambda nb, pb: (0, pb, 0)),     # fc weight
        ],
        out_specs=pl.BlockSpec((bn, o_pad), lambda nb, pb: (nb, 0)),
        compiler_params=pltpu.CompilerParams(
            dimension_semantics=("parallel", "arbitrary"),
            vmem_limit_bytes=vmem_limit,
        ),
        cost_estimate=pl.CostEstimate(
            flops=flops, transcendentals=0, bytes_accessed=bytes_accessed),
    )(conv_w, conv_b, fc_b, x_cf, wr)

    return out_pad[:, :out_planes]


# ---------------------------------------------------------------------------
# Parameters: PyTorch-layout init + one-time relayout for the kernel.
# ---------------------------------------------------------------------------
def init_params(key, c_in, c_bb, h, w, out_planes):
    """Parameters exactly as nn.Conv2d(1x1)/nn.Linear would store them."""
    dim = c_bb * h * w
    k1, k2, k3, k4 = jax.random.split(key, 4)
    return {
        "conv_w": jax.random.normal(k1, (c_bb, c_in), jnp.float32) * 0.1,
        "conv_b": jax.random.normal(k2, (c_bb,), jnp.float32) * 0.01,
        "fc_w": jax.random.normal(k3, (out_planes, dim), jnp.float32) * 0.02,
        "fc_b": jax.random.normal(k4, (out_planes,), jnp.float32) * 0.01,
    }


def prepare_params(torch_params, h, w):
    """One-time relayout: fold PyTorch's channel-major flatten and the Linear transpose
    into the fc weight, pad out_planes up to a lane multiple (lane-dense DMA + unmasked
    output stores), and store the MXU operand in bf16."""
    c_bb = torch_params["conv_w"].shape[0]
    out_planes, dim = torch_params["fc_w"].shape
    p = h * w
    assert dim == c_bb * p
    o_pad = ((out_planes + LANE - 1) // LANE) * LANE
    # fc_w[o, c*P + s]  ->  Wr[c, s, o]   (then zero-pad o -> o_pad, cast bf16)
    wr = jnp.transpose(torch_params["fc_w"].reshape(out_planes, c_bb, p), (1, 2, 0))
    wr = jnp.pad(wr, ((0, 0), (0, 0), (0, o_pad - out_planes))).astype(jnp.bfloat16)
    fc_b = jnp.pad(torch_params["fc_b"], (0, o_pad - out_planes)).reshape(1, o_pad)
    return {
        "conv_w": torch_params["conv_w"],
        "conv_b": torch_params["conv_b"],
        "fc_w_cpo": wr,         # (C_bb, P, O_pad) bf16
        "fc_b2d": fc_b,         # (1, O_pad) f32
    }


if __name__ == "__main__":
    key = jax.random.PRNGKey(0)
    kx, kp = jax.random.split(key)

    # small shapes consistent with the module
    N, C_IN, H, W = 2, 4, 16, 16
    C_BB = 8                        # backbone output channels
    DIM = C_BB * H * W              # flattened feature dim
    OUT_PLANES = 10

    x = jax.random.normal(kx, (N, C_IN, H, W), jnp.float32)
    torch_params = init_params(kp, C_IN, C_BB, H, W, OUT_PLANES)
    params = prepare_params(torch_params, H, W)   # one-time weight relayout

    fwd = jax.jit(functools.partial(my_model_forward, out_planes=OUT_PLANES))
    out = jax.block_until_ready(fwd(x, params))
    assert out.shape == (N, OUT_PLANES), out.shape

    # sanity check vs. plain JAX reference with PyTorch semantics/layout
    x_pix = jnp.transpose(x, (0, 2, 3, 1)).reshape(N * H * W, C_IN)
    ref_bb = jnp.maximum(
        x_pix @ torch_params["conv_w"].T + torch_params["conv_b"], 0.0)
    ref_feat = jnp.transpose(
        ref_bb.reshape(N, H, W, C_BB), (0, 3, 1, 2)).reshape(N, DIM)
    ref = ref_feat @ torch_params["fc_w"].T + torch_params["fc_b"]
    err = float(jnp.max(jnp.abs(out - ref)))
    # bf16 MXU operands (f32 accumulation) -> loosened tolerance vs the f32 reference
    assert jnp.allclose(out, ref, atol=5e-2, rtol=5e-2), err

    print("KERNEL_OK")
</pallas_src>

<mosaic_0001>
module attributes {stable_mosaic.version = 11 : i64} {
  func.func @_fused_kernel(%arg0: i32, %arg1: i32, %arg2: memref<8x4xf32, #tpu.memory_space<smem>>, %arg3: memref<8xf32, #tpu.memory_space<smem>>, %arg4: memref<1x128xf32, #tpu.memory_space<vmem>>, %arg5: memref<4x2x256xf32, #tpu.memory_space<vmem>>, %arg6: memref<8x256x128xbf16, #tpu.memory_space<vmem>>, %arg7: memref<2x128xf32, #tpu.memory_space<vmem>>) attributes {dimension_semantics = [#tpu.dimension_semantics<parallel>, #tpu.dimension_semantics<arbitrary>], iteration_bounds = array<i64: 1, 1>, scalar_prefetch = 0 : i64, scratch_operands = 0 : i64, tpu.core_type = #tpu.core_type<tc>, window_params = [{transform_indices = @transform_0, window_bounds = array<i64: 8, 4>}, {transform_indices = @transform_1, window_bounds = array<i64: 8>}, {pipeline_mode = #tpu.pipeline_mode<synchronous>, transform_indices = @transform_2, window_bounds = array<i64: 1, 128>}, {transform_indices = @transform_3, window_bounds = array<i64: 4, 2, 256>}, {transform_indices = @transform_4, window_bounds = array<i64: 8, 256, 128>}, {transform_indices = @transform_5, window_bounds = array<i64: 2, 128>}]} {
    %c0_i32 = arith.constant 0 : i32
    %0 = arith.cmpi eq, %arg1, %c0_i32 : i32
    %1 = arith.extui %0 : i1 to i32
    %c0_i32_0 = arith.constant 0 : i32
    %2 = arith.cmpi ne, %1, %c0_i32_0 : i32
    scf.if %2 {
      %cst_207 = arith.constant 0.000000e+00 : f32
      %274 = vector.broadcast %cst_207 : f32 to vector<2x128xf32>
      %c0_208 = arith.constant 0 : index
      %c0_209 = arith.constant 0 : index
      %275 = vector.load %arg7[%c0_208, %c0_209] : memref<2x128xf32, #tpu.memory_space<vmem>>, vector<2x128xf32>
      tpu.vector_store %arg7[%c0_208, %c0_209], %274 {strides = array<i32>} : memref<2x128xf32, #tpu.memory_space<vmem>>, vector<2x128xf32>,
    } else {
    }
    %cst = arith.constant 0.000000e+00 : f32
    %3 = vector.broadcast %cst : f32 to vector<2x128xf32>
    %c0 = arith.constant 0 : index
    %c0_1 = arith.constant 0 : index
    %c0_2 = arith.constant 0 : index
    %4 = vector.load %arg5[%c0, %c0_1, %c0_2] : memref<4x2x256xf32, #tpu.memory_space<vmem>>, vector<1x2x256xf32>
    %5 = vector.shape_cast %4 : vector<1x2x256xf32> to vector<2x256xf32>
    %c0_3 = arith.constant 0 : index
    %c0_4 = arith.constant 0 : index
    %6 = memref.load %arg2[%c0_3, %c0_4] : memref<8x4xf32, #tpu.memory_space<smem>>
    %7 = vector.broadcast %6 : f32 to vector<2x256xf32>
    %8 = arith.mulf %5, %7 : vector<2x256xf32>
    %c1 = arith.constant 1 : index
    %c0_5 = arith.constant 0 : index
    %c0_6 = arith.constant 0 : index
    %9 = vector.load %arg5[%c1, %c0_5, %c0_6] : memref<4x2x256xf32, #tpu.memory_space<vmem>>, vector<1x2x256xf32>
    %10 = vector.shape_cast %9 : vector<1x2x256xf32> to vector<2x256xf32>
    %c0_7 = arith.constant 0 : index
    %c1_8 = arith.constant 1 : index
    %11 = memref.load %arg2[%c0_7, %c1_8] : memref<8x4xf32, #tpu.memory_space<smem>>
    %12 = vector.broadcast %11 : f32 to vector<2x256xf32>
    %13 = arith.mulf %10, %12 : vector<2x256xf32>
    %14 = arith.addf %8, %13 : vector<2x256xf32>
    %c2 = arith.constant 2 : index
    %c0_9 = arith.constant 0 : index
    %c0_10 = arith.constant 0 : index
    %15 = vector.load %arg5[%c2, %c0_9, %c0_10] : memref<4x2x256xf32, #tpu.memory_space<vmem>>, vector<1x2x256xf32>
    %16 = vector.shape_cast %15 : vector<1x2x256xf32> to vector<2x256xf32>
    %c0_11 = arith.constant 0 : index
    %c2_12 = arith.constant 2 : index
    %17 = memref.load %arg2[%c0_11, %c2_12] : memref<8x4xf32, #tpu.memory_space<smem>>
    %18 = vector.broadcast %17 : f32 to vector<2x256xf32>
    %19 = arith.mulf %16, %18 : vector<2x256xf32>
    %20 = arith.addf %14, %19 : vector<2x256xf32>
    %c3 = arith.constant 3 : index
    %c0_13 = arith.constant 0 : index
    %c0_14 = arith.constant 0 : index
    %21 = vector.load %arg5[%c3, %c0_13, %c0_14] : memref<4x2x256xf32, #tpu.memory_space<vmem>>, vector<1x2x256xf32>
    %22 = vector.shape_cast %21 : vector<1x2x256xf32> to vector<2x256xf32>
    %c0_15 = arith.constant 0 : index
    %c3_16 = arith.constant 3 : index
    %23 = memref.load %arg2[%c0_15, %c3_16] : memref<8x4xf32, #tpu.memory_space<smem>>
    %24 = vector.broadcast %23 : f32 to vector<2x256xf32>
    %25 = arith.mulf %22, %24 : vector<2x256xf32>
    %26 = arith.addf %20, %25 : vector<2x256xf32>
    %c0_17 = arith.constant 0 : index
    %27 = memref.load %arg3[%c0_17] : memref<8xf32, #tpu.memory_space<smem>>
    %28 = vector.broadcast %27 : f32 to vector<2x256xf32>
    %29 = arith.addf %26, %28 : vector<2x256xf32>
    %cst_18 = arith.constant 0.000000e+00 : f32
    %30 = vector.broadcast %cst_18 : f32 to vector<2x256xf32>
    %31 = arith.maximumf %29, %30 : vector<2x256xf32>
    %32 = arith.truncf %31 : vector<2x256xf32> to vector<2x256xbf16>
    %c0_19 = arith.constant 0 : index
    %c0_20 = arith.constant 0 : index
    %c0_21 = arith.constant 0 : index
    %33 = vector.load %arg6[%c0_19, %c0_20, %c0_21] : memref<8x256x128xbf16, #tpu.memory_space<vmem>>, vector<1x256x128xbf16>
    %34 = vector.shape_cast %33 : vector<1x256x128xbf16> to vector<256x128xbf16>
    %cst_22 = arith.constant dense<0.000000e+00> : vector<2x128xf32>
    %35 = tpu.matmul %32, %34, %cst_22 {dimension_numbers = #tpu.dot_dimension_numbers<[1], [0], [0], [1], [0, 0, 1, 1], [], []>} : vector<2x256xbf16>, vector<256x128xbf16>, vector<2x128xf32> -> vector<2x128xf32>
    %36 = arith.addf %3, %35 : vector<2x128xf32>
    %c0_23 = arith.constant 0 : index
    %c0_24 = arith.constant 0 : index
    %c0_25 = arith.constant 0 : index
    %37 = vector.load %arg5[%c0_23, %c0_24, %c0_25] : memref<4x2x256xf32, #tpu.memory_space<vmem>>, vector<1x2x256xf32>
    %38 = vector.shape_cast %37 : vector<1x2x256xf32> to vector<2x256xf32>
    %c1_26 = arith.constant 1 : index
    %c0_27 = arith.constant 0 : index
    %39 = memref.load %arg2[%c1_26, %c0_27] : memref<8x4xf32, #tpu.memory_space<smem>>
    %40 = vector.broadcast %39 : f32 to vector<2x256xf32>
    %41 = arith.mulf %38, %40 : vector<2x256xf32>
    %c1_28 = arith.constant 1 : index
    %c0_29 = arith.constant 0 : index
    %c0_30 = arith.constant 0 : index
    %42 = vector.load %arg5[%c1_28, %c0_29, %c0_30] : memref<4x2x256xf32, #tpu.memory_space<vmem>>, vector<1x2x256xf32>
    %43 = vector.shape_cast %42 : vector<1x2x256xf32> to vector<2x256xf32>
    %c1_31 = arith.constant 1 : index
    %c1_32 = arith.constant 1 : index
    %44 = memref.load %arg2[%c1_31, %c1_32] : memref<8x4xf32, #tpu.memory_space<smem>>
    %45 = vector.broadcast %44 : f32 to vector<2x256xf32>
    %46 = arith.mulf %43, %45 : vector<2x256xf32>
    %47 = arith.addf %41, %46 : vector<2x256xf32>
    %c2_33 = arith.constant 2 : index
    %c0_34 = arith.constant 0 : index
    %c0_35 = arith.constant 0 : index
    %48 = vector.load %arg5[%c2_33, %c0_34, %c0_35] : memref<4x2x256xf32, #tpu.memory_space<vmem>>, vector<1x2x256xf32>
    %49 = vector.shape_cast %48 : vector<1x2x256xf32> to vector<2x256xf32>
    %c1_36 = arith.constant 1 : index
    %c2_37 = arith.constant 2 : index
    %50 = memref.load %arg2[%c1_36, %c2_37] : memref<8x4xf32, #tpu.memory_space<smem>>
    %51 = vector.broadcast %50 : f32 to vector<2x256xf32>
    %52 = arith.mulf %49, %51 : vector<2x256xf32>
    %53 = arith.addf %47, %52 : vector<2x256xf32>
    %c3_38 = arith.constant 3 : index
    %c0_39 = arith.constant 0 : index
    %c0_40 = arith.constant 0 : index
    %54 = vector.load %arg5[%c3_38, %c0_39, %c0_40] : memref<4x2x256xf32, #tpu.memory_space<vmem>>, vector<1x2x256xf32>
    %55 = vector.shape_cast %54 : vector<1x2x256xf32> to vector<2x256xf32>
    %c1_41 = arith.constant 1 : index
    %c3_42 = arith.constant 3 : index
    %56 = memref.load %arg2[%c1_41, %c3_42] : memref<8x4xf32, #tpu.memory_space<smem>>
    %57 = vector.broadcast %56 : f32 to vector<2x256xf32>
    %58 = arith.mulf %55, %57 : vector<2x256xf32>
    %59 = arith.addf %53, %58 : vector<2x256xf32>
    %c1_43 = arith.constant 1 : index
    %60 = memref.load %arg3[%c1_43] : memref<8xf32, #tpu.memory_space<smem>>
    %61 = vector.broadcast %60 : f32 to vector<2x256xf32>
    %62 = arith.addf %59, %61 : vector<2x256xf32>
    %cst_44 = arith.constant 0.000000e+00 : f32
    %63 = vector.broadcast %cst_44 : f32 to vector<2x256xf32>
    %64 = arith.maximumf %62, %63 : vector<2x256xf32>
    %65 = arith.truncf %64 : vector<2x256xf32> to vector<2x256xbf16>
    %c1_45 = arith.constant 1 : index
    %c0_46 = arith.constant 0 : index
    %c0_47 = arith.constant 0 : index
    %66 = vector.load %arg6[%c1_45, %c0_46, %c0_47] : memref<8x256x128xbf16, #tpu.memory_space<vmem>>, vector<1x256x128xbf16>
    %67 = vector.shape_cast %66 : vector<1x256x128xbf16> to vector<256x128xbf16>
    %cst_48 = arith.constant dense<0.000000e+00> : vector<2x128xf32>
    %68 = tpu.matmul %65, %67, %cst_48 {dimension_numbers = #tpu.dot_dimension_numbers<[1], [0], [0], [1], [0, 0, 1, 1], [], []>} : vector<2x256xbf16>, vector<256x128xbf16>, vector<2x128xf32> -> vector<2x128xf32>
    %69 = arith.addf %36, %68 : vector<2x128xf32>
    %c0_49 = arith.constant 0 : index
    %c0_50 = arith.constant 0 : index
    %c0_51 = arith.constant 0 : index
    %70 = vector.load %arg5[%c0_49, %c0_50, %c0_51] : memref<4x2x256xf32, #tpu.memory_space<vmem>>, vector<1x2x256xf32>
    %71 = vector.shape_cast %70 : vector<1x2x256xf32> to vector<2x256xf32>
    %c2_52 = arith.constant 2 : index
    %c0_53 = arith.constant 0 : index
    %72 = memref.load %arg2[%c2_52, %c0_53] : memref<8x4xf32, #tpu.memory_space<smem>>
    %73 = vector.broadcast %72 : f32 to vector<2x256xf32>
    %74 = arith.mulf %71, %73 : vector<2x256xf32>
    %c1_54 = arith.constant 1 : index
    %c0_55 = arith.constant 0 : index
    %c0_56 = arith.constant 0 : index
    %75 = vector.load %arg5[%c1_54, %c0_55, %c0_56] : memref<4x2x256xf32, #tpu.memory_space<vmem>>, vector<1x2x256xf32>
    %76 = vector.shape_cast %75 : vector<1x2x256xf32> to vector<2x256xf32>
    %c2_57 = arith.constant 2 : index
    %c1_58 = arith.constant 1 : index
    %77 = memref.load %arg2[%c2_57, %c1_58] : memref<8x4xf32, #tpu.memory_space<smem>>
    %78 = vector.broadcast %77 : f32 to vector<2x256xf32>
    %79 = arith.mulf %76, %78 : vector<2x256xf32>
    %80 = arith.addf %74, %79 : vector<2x256xf32>
    %c2_59 = arith.constant 2 : index
    %c0_60 = arith.constant 0 : index
    %c0_61 = arith.constant 0 : index
    %81 = vector.load %arg5[%c2_59, %c0_60, %c0_61] : memref<4x2x256xf32, #tpu.memory_space<vmem>>, vector<1x2x256xf32>
    %82 = vector.shape_cast %81 : vector<1x2x256xf32> to vector<2x256xf32>
    %c2_62 = arith.constant 2 : index
    %c2_63 = arith.constant 2 : index
    %83 = memref.load %arg2[%c2_62, %c2_63] : memref<8x4xf32, #tpu.memory_space<smem>>
    %84 = vector.broadcast %83 : f32 to vector<2x256xf32>
    %85 = arith.mulf %82, %84 : vector<2x256xf32>
    %86 = arith.addf %80, %85 : vector<2x256xf32>
    %c3_64 = arith.constant 3 : index
    %c0_65 = arith.constant 0 : index
    %c0_66 = arith.constant 0 : index
    %87 = vector.load %arg5[%c3_64, %c0_65, %c0_66] : memref<4x2x256xf32, #tpu.memory_space<vmem>>, vector<1x2x256xf32>
    %88 = vector.shape_cast %87 : vector<1x2x256xf32> to vector<2x256xf32>
    %c2_67 = arith.constant 2 : index
    %c3_68 = arith.constant 3 : index
    %89 = memref.load %arg2[%c2_67, %c3_68] : memref<8x4xf32, #tpu.memory_space<smem>>
    %90 = vector.broadcast %89 : f32 to vector<2x256xf32>
    %91 = arith.mulf %88, %90 : vector<2x256xf32>
    %92 = arith.addf %86, %91 : vector<2x256xf32>
    %c2_69 = arith.constant 2 : index
    %93 = memref.load %arg3[%c2_69] : memref<8xf32, #tpu.memory_space<smem>>
    %94 = vector.broadcast %93 : f32 to vector<2x256xf32>
    %95 = arith.addf %92, %94 : vector<2x256xf32>
    %cst_70 = arith.constant 0.000000e+00 : f32
    %96 = vector.broadcast %cst_70 : f32 to vector<2x256xf32>
    %97 = arith.maximumf %95, %96 : vector<2x256xf32>
    %98 = arith.truncf %97 : vector<2x256xf32> to vector<2x256xbf16>
    %c2_71 = arith.constant 2 : index
    %c0_72 = arith.constant 0 : index
    %c0_73 = arith.constant 0 : index
    %99 = vector.load %arg6[%c2_71, %c0_72, %c0_73] : memref<8x256x128xbf16, #tpu.memory_space<vmem>>, vector<1x256x128xbf16>
    %100 = vector.shape_cast %99 : vector<1x256x128xbf16> to vector<256x128xbf16>
    %cst_74 = arith.constant dense<0.000000e+00> : vector<2x128xf32>
    %101 = tpu.matmul %98, %100, %cst_74 {dimension_numbers = #tpu.dot_dimension_numbers<[1], [0], [0], [1], [0, 0, 1, 1], [], []>} : vector<2x256xbf16>, vector<256x128xbf16>, vector<2x128xf32> -> vector<2x128xf32>
    %102 = arith.addf %69, %101 : vector<2x128xf32>
    %c0_75 = arith.constant 0 : index
    %c0_76 = arith.constant 0 : index
    %c0_77 = arith.constant 0 : index
    %103 = vector.load %arg5[%c0_75, %c0_76, %c0_77] : memref<4x2x256xf32, #tpu.memory_space<vmem>>, vector<1x2x256xf32>
    %104 = vector.shape_cast %103 : vector<1x2x256xf32> to vector<2x256xf32>
    %c3_78 = arith.constant 3 : index
    %c0_79 = arith.constant 0 : index
    %105 = memref.load %arg2[%c3_78, %c0_79] : memref<8x4xf32, #tpu.memory_space<smem>>
    %106 = vector.broadcast %105 : f32 to vector<2x256xf32>
    %107 = arith.mulf %104, %106 : vector<2x256xf32>
    %c1_80 = arith.constant 1 : index
    %c0_81 = arith.constant 0 : index
    %c0_82 = arith.constant 0 : index
    %108 = vector.load %arg5[%c1_80, %c0_81, %c0_82] : memref<4x2x256xf32, #tpu.memory_space<vmem>>, vector<1x2x256xf32>
    %109 = vector.shape_cast %108 : vector<1x2x256xf32> to vector<2x256xf32>
    %c3_83 = arith.constant 3 : index
    %c1_84 = arith.constant 1 : index
    %110 = memref.load %arg2[%c3_83, %c1_84] : memref<8x4xf32, #tpu.memory_space<smem>>
    %111 = vector.broadcast %110 : f32 to vector<2x256xf32>
    %112 = arith.mulf %109, %111 : vector<2x256xf32>
    %113 = arith.addf %107, %112 : vector<2x256xf32>
    %c2_85 = arith.constant 2 : index
    %c0_86 = arith.constant 0 : index
    %c0_87 = arith.constant 0 : index
    %114 = vector.load %arg5[%c2_85, %c0_86, %c0_87] : memref<4x2x256xf32, #tpu.memory_space<vmem>>, vector<1x2x256xf32>
    %115 = vector.shape_cast %114 : vector<1x2x256xf32> to vector<2x256xf32>
    %c3_88 = arith.constant 3 : index
    %c2_89 = arith.constant 2 : index
    %116 = memref.load %arg2[%c3_88, %c2_89] : memref<8x4xf32, #tpu.memory_space<smem>>
    %117 = vector.broadcast %116 : f32 to vector<2x256xf32>
    %118 = arith.mulf %115, %117 : vector<2x256xf32>
    %119 = arith.addf %113, %118 : vector<2x256xf32>
    %c3_90 = arith.constant 3 : index
    %c0_91 = arith.constant 0 : index
    %c0_92 = arith.constant 0 : index
    %120 = vector.load %arg5[%c3_90, %c0_91, %c0_92] : memref<4x2x256xf32, #tpu.memory_space<vmem>>, vector<1x2x256xf32>
    %121 = vector.shape_cast %120 : vector<1x2x256xf32> to vector<2x256xf32>
    %c3_93 = arith.constant 3 : index
    %c3_94 = arith.constant 3 : index
    %122 = memref.load %arg2[%c3_93, %c3_94] : memref<8x4xf32, #tpu.memory_space<smem>>
    %123 = vector.broadcast %122 : f32 to vector<2x256xf32>
    %124 = arith.mulf %121, %123 : vector<2x256xf32>
    %125 = arith.addf %119, %124 : vector<2x256xf32>
    %c3_95 = arith.constant 3 : index
    %126 = memref.load %arg3[%c3_95] : memref<8xf32, #tpu.memory_space<smem>>
    %127 = vector.broadcast %126 : f32 to vector<2x256xf32>
    %128 = arith.addf %125, %127 : vector<2x256xf32>
    %cst_96 = arith.constant 0.000000e+00 : f32
    %129 = vector.broadcast %cst_96 : f32 to vector<2x256xf32>
    %130 = arith.maximumf %128, %129 : vector<2x256xf32>
    %131 = arith.truncf %130 : vector<2x256xf32> to vector<2x256xbf16>
    %c3_97 = arith.constant 3 : index
    %c0_98 = arith.constant 0 : index
    %c0_99 = arith.constant 0 : index
    %132 = vector.load %arg6[%c3_97, %c0_98, %c0_99] : memref<8x256x128xbf16, #tpu.memory_space<vmem>>, vector<1x256x128xbf16>
    %133 = vector.shape_cast %132 : vector<1x256x128xbf16> to vector<256x128xbf16>
    %cst_100 = arith.constant dense<0.000000e+00> : vector<2x128xf32>
    %134 = tpu.matmul %131, %133, %cst_100 {dimension_numbers = #tpu.dot_dimension_numbers<[1], [0], [0], [1], [0, 0, 1, 1], [], []>} : vector<2x256xbf16>, vector<256x128xbf16>, vector<2x128xf32> -> vector<2x128xf32>
    %135 = arith.addf %102, %134 : vector<2x128xf32>
    %c0_101 = arith.constant 0 : index
    %c0_102 = arith.constant 0 : index
    %c0_103 = arith.constant 0 : index
    %136 = vector.load %arg5[%c0_101, %c0_102, %c0_103] : memref<4x2x256xf32, #tpu.memory_space<vmem>>, vector<1x2x256xf32>
    %137 = vector.shape_cast %136 : vector<1x2x256xf32> to vector<2x256xf32>
    %c4 = arith.constant 4 : index
    %c0_104 = arith.constant 0 : index
    %138 = memref.load %arg2[%c4, %c0_104] : memref<8x4xf32, #tpu.memory_space<smem>>
    %139 = vector.broadcast %138 : f32 to vector<2x256xf32>
    %140 = arith.mulf %137, %139 : vector<2x256xf32>
    %c1_105 = arith.constant 1 : index
    %c0_106 = arith.constant 0 : index
    %c0_107 = arith.constant 0 : index
    %141 = vector.load %arg5[%c1_105, %c0_106, %c0_107] : memref<4x2x256xf32, #tpu.memory_space<vmem>>, vector<1x2x256xf32>
    %142 = vector.shape_cast %141 : vector<1x2x256xf32> to vector<2x256xf32>
    %c4_108 = arith.constant 4 : index
    %c1_109 = arith.constant 1 : index
    %143 = memref.load %arg2[%c4_108, %c1_109] : memref<8x4xf32, #tpu.memory_space<smem>>
    %144 = vector.broadcast %143 : f32 to vector<2x256xf32>
    %145 = arith.mulf %142, %144 : vector<2x256xf32>
    %146 = arith.addf %140, %145 : vector<2x256xf32>
    %c2_110 = arith.constant 2 : index
    %c0_111 = arith.constant 0 : index
    %c0_112 = arith.constant 0 : index
    %147 = vector.load %arg5[%c2_110, %c0_111, %c0_112] : memref<4x2x256xf32, #tpu.memory_space<vmem>>, vector<1x2x256xf32>
    %148 = vector.shape_cast %147 : vector<1x2x256xf32> to vector<2x256xf32>
    %c4_113 = arith.constant 4 : index
    %c2_114 = arith.constant 2 : index
    %149 = memref.load %arg2[%c4_113, %c2_114] : memref<8x4xf32, #tpu.memory_space<smem>>
    %150 = vector.broadcast %149 : f32 to vector<2x256xf32>
    %151 = arith.mulf %148, %150 : vector<2x256xf32>
    %152 = arith.addf %146, %151 : vector<2x256xf32>
    %c3_115 = arith.constant 3 : index
    %c0_116 = arith.constant 0 : index
    %c0_117 = arith.constant 0 : index
    %153 = vector.load %arg5[%c3_115, %c0_116, %c0_117] : memref<4x2x256xf32, #tpu.memory_space<vmem>>, vector<1x2x256xf32>
    %154 = vector.shape_cast %153 : vector<1x2x256xf32> to vector<2x256xf32>
    %c4_118 = arith.constant 4 : index
    %c3_119 = arith.constant 3 : index
    %155 = memref.load %arg2[%c4_118, %c3_119] : memref<8x4xf32, #tpu.memory_space<smem>>
    %156 = vector.broadcast %155 : f32 to vector<2x256xf32>
    %157 = arith.mulf %154, %156 : vector<2x256xf32>
    %158 = arith.addf %152, %157 : vector<2x256xf32>
    %c4_120 = arith.constant 4 : index
    %159 = memref.load %arg3[%c4_120] : memref<8xf32, #tpu.memory_space<smem>>
    %160 = vector.broadcast %159 : f32 to vector<2x256xf32>
    %161 = arith.addf %158, %160 : vector<2x256xf32>
    %cst_121 = arith.constant 0.000000e+00 : f32
    %162 = vector.broadcast %cst_121 : f32 to vector<2x256xf32>
    %163 = arith.maximumf %161, %162 : vector<2x256xf32>
    %164 = arith.truncf %163 : vector<2x256xf32> to vector<2x256xbf16>
    %c4_122 = arith.constant 4 : index
    %c0_123 = arith.constant 0 : index
    %c0_124 = arith.constant 0 : index
    %165 = vector.load %arg6[%c4_122, %c0_123, %c0_124] : memref<8x256x128xbf16, #tpu.memory_space<vmem>>, vector<1x256x128xbf16>
    %166 = vector.shape_cast %165 : vector<1x256x128xbf16> to vector<256x128xbf16>
    %cst_125 = arith.constant dense<0.000000e+00> : vector<2x128xf32>
    %167 = tpu.matmul %164, %166, %cst_125 {dimension_numbers = #tpu.dot_dimension_numbers<[1], [0], [0], [1], [0, 0, 1, 1], [], []>} : vector<2x256xbf16>, vector<256x128xbf16>, vector<2x128xf32> -> vector<2x128xf32>
    %168 = arith.addf %135, %167 : vector<2x128xf32>
    %c0_126 = arith.constant 0 : index
    %c0_127 = arith.constant 0 : index
    %c0_128 = arith.constant 0 : index
    %169 = vector.load %arg5[%c0_126, %c0_127, %c0_128] : memref<4x2x256xf32, #tpu.memory_space<vmem>>, vector<1x2x256xf32>
    %170 = vector.shape_cast %169 : vector<1x2x256xf32> to vector<2x256xf32>
    %c5 = arith.constant 5 : index
    %c0_129 = arith.constant 0 : index
    %171 = memref.load %arg2[%c5, %c0_129] : memref<8x4xf32, #tpu.memory_space<smem>>
    %172 = vector.broadcast %171 : f32 to vector<2x256xf32>
    %173 = arith.mulf %170, %172 : vector<2x256xf32>
    %c1_130 = arith.constant 1 : index
    %c0_131 = arith.constant 0 : index
    %c0_132 = arith.constant 0 : index
    %174 = vector.load %arg5[%c1_130, %c0_131, %c0_132] : memref<4x2x256xf32, #tpu.memory_space<vmem>>, vector<1x2x256xf32>
    %175 = vector.shape_cast %174 : vector<1x2x256xf32> to vector<2x256xf32>
    %c5_133 = arith.constant 5 : index
    %c1_134 = arith.constant 1 : index
    %176 = memref.load %arg2[%c5_133, %c1_134] : memref<8x4xf32, #tpu.memory_space<smem>>
    %177 = vector.broadcast %176 : f32 to vector<2x256xf32>
    %178 = arith.mulf %175, %177 : vector<2x256xf32>
    %179 = arith.addf %173, %178 : vector<2x256xf32>
    %c2_135 = arith.constant 2 : index
    %c0_136 = arith.constant 0 : index
    %c0_137 = arith.constant 0 : index
    %180 = vector.load %arg5[%c2_135, %c0_136, %c0_137] : memref<4x2x256xf32, #tpu.memory_space<vmem>>, vector<1x2x256xf32>
    %181 = vector.shape_cast %180 : vector<1x2x256xf32> to vector<2x256xf32>
    %c5_138 = arith.constant 5 : index
    %c2_139 = arith.constant 2 : index
    %182 = memref.load %arg2[%c5_138, %c2_139] : memref<8x4xf32, #tpu.memory_space<smem>>
    %183 = vector.broadcast %182 : f32 to vector<2x256xf32>
    %184 = arith.mulf %181, %183 : vector<2x256xf32>
    %185 = arith.addf %179, %184 : vector<2x256xf32>
    %c3_140 = arith.constant 3 : index
    %c0_141 = arith.constant 0 : index
    %c0_142 = arith.constant 0 : index
    %186 = vector.load %arg5[%c3_140, %c0_141, %c0_142] : memref<4x2x256xf32, #tpu.memory_space<vmem>>, vector<1x2x256xf32>
    %187 = vector.shape_cast %186 : vector<1x2x256xf32> to vector<2x256xf32>
    %c5_143 = arith.constant 5 : index
    %c3_144 = arith.constant 3 : index
    %188 = memref.load %arg2[%c5_143, %c3_144] : memref<8x4xf32, #tpu.memory_space<smem>>
    %189 = vector.broadcast %188 : f32 to vector<2x256xf32>
    %190 = arith.mulf %187, %189 : vector<2x256xf32>
    %191 = arith.addf %185, %190 : vector<2x256xf32>
    %c5_145 = arith.constant 5 : index
    %192 = memref.load %arg3[%c5_145] : memref<8xf32, #tpu.memory_space<smem>>
    %193 = vector.broadcast %192 : f32 to vector<2x256xf32>
    %194 = arith.addf %191, %193 : vector<2x256xf32>
    %cst_146 = arith.constant 0.000000e+00 : f32
    %195 = vector.broadcast %cst_146 : f32 to vector<2x256xf32>
    %196 = arith.maximumf %194, %195 : vector<2x256xf32>
    %197 = arith.truncf %196 : vector<2x256xf32> to vector<2x256xbf16>
    %c5_147 = arith.constant 5 : index
    %c0_148 = arith.constant 0 : index
    %c0_149 = arith.constant 0 : index
    %198 = vector.load %arg6[%c5_147, %c0_148, %c0_149] : memref<8x256x128xbf16, #tpu.memory_space<vmem>>, vector<1x256x128xbf16>
    %199 = vector.shape_cast %198 : vector<1x256x128xbf16> to vector<256x128xbf16>
    %cst_150 = arith.constant dense<0.000000e+00> : vector<2x128xf32>
    %200 = tpu.matmul %197, %199, %cst_150 {dimension_numbers = #tpu.dot_dimension_numbers<[1], [0], [0], [1], [0, 0, 1, 1], [], []>} : vector<2x256xbf16>, vector<256x128xbf16>, vector<2x128xf32> -> vector<2x128xf32>
    %201 = arith.addf %168, %200 : vector<2x128xf32>
    %c0_151 = arith.constant 0 : index
    %c0_152 = arith.constant 0 : index
    %c0_153 = arith.constant 0 : index
    %202 = vector.load %arg5[%c0_151, %c0_152, %c0_153] : memref<4x2x256xf32, #tpu.memory_space<vmem>>, vector<1x2x256xf32>
    %203 = vector.shape_cast %202 : vector<1x2x256xf32> to vector<2x256xf32>
    %c6 = arith.constant 6 : index
    %c0_154 = arith.constant 0 : index
    %204 = memref.load %arg2[%c6, %c0_154] : memref<8x4xf32, #tpu.memory_space<smem>>
    %205 = vector.broadcast %204 : f32 to vector<2x256xf32>
    %206 = arith.mulf %203, %205 : vector<2x256xf32>
    %c1_155 = arith.constant 1 : index
    %c0_156 = arith.constant 0 : index
    %c0_157 = arith.constant 0 : index
    %207 = vector.load %arg5[%c1_155, %c0_156, %c0_157] : memref<4x2x256xf32, #tpu.memory_space<vmem>>, vector<1x2x256xf32>
    %208 = vector.shape_cast %207 : vector<1x2x256xf32> to vector<2x256xf32>
    %c6_158 = arith.constant 6 : index
    %c1_159 = arith.constant 1 : index
    %209 = memref.load %arg2[%c6_158, %c1_159] : memref<8x4xf32, #tpu.memory_space<smem>>
    %210 = vector.broadcast %209 : f32 to vector<2x256xf32>
    %211 = arith.mulf %208, %210 : vector<2x256xf32>
    %212 = arith.addf %206, %211 : vector<2x256xf32>
    %c2_160 = arith.constant 2 : index
    %c0_161 = arith.constant 0 : index
    %c0_162 = arith.constant 0 : index
    %213 = vector.load %arg5[%c2_160, %c0_161, %c0_162] : memref<4x2x256xf32, #tpu.memory_space<vmem>>, vector<1x2x256xf32>
    %214 = vector.shape_cast %213 : vector<1x2x256xf32> to vector<2x256xf32>
    %c6_163 = arith.constant 6 : index
    %c2_164 = arith.constant 2 : index
    %215 = memref.load %arg2[%c6_163, %c2_164] : memref<8x4xf32, #tpu.memory_space<smem>>
    %216 = vector.broadcast %215 : f32 to vector<2x256xf32>
    %217 = arith.mulf %214, %216 : vector<2x256xf32>
    %218 = arith.addf %212, %217 : vector<2x256xf32>
    %c3_165 = arith.constant 3 : index
    %c0_166 = arith.constant 0 : index
    %c0_167 = arith.constant 0 : index
    %219 = vector.load %arg5[%c3_165, %c0_166, %c0_167] : memref<4x2x256xf32, #tpu.memory_space<vmem>>, vector<1x2x256xf32>
    %220 = vector.shape_cast %219 : vector<1x2x256xf32> to vector<2x256xf32>
    %c6_168 = arith.constant 6 : index
    %c3_169 = arith.constant 3 : index
    %221 = memref.load %arg2[%c6_168, %c3_169] : memref<8x4xf32, #tpu.memory_space<smem>>
    %222 = vector.broadcast %221 : f32 to vector<2x256xf32>
    %223 = arith.mulf %220, %222 : vector<2x256xf32>
    %224 = arith.addf %218, %223 : vector<2x256xf32>
    %c6_170 = arith.constant 6 : index
    %225 = memref.load %arg3[%c6_170] : memref<8xf32, #tpu.memory_space<smem>>
    %226 = vector.broadcast %225 : f32 to vector<2x256xf32>
    %227 = arith.addf %224, %226 : vector<2x256xf32>
    %cst_171 = arith.constant 0.000000e+00 : f32
    %228 = vector.broadcast %cst_171 : f32 to vector<2x256xf32>
    %229 = arith.maximumf %227, %228 : vector<2x256xf32>
    %230 = arith.truncf %229 : vector<2x256xf32> to vector<2x256xbf16>
    %c6_172 = arith.constant 6 : index
    %c0_173 = arith.constant 0 : index
    %c0_174 = arith.constant 0 : index
    %231 = vector.load %arg6[%c6_172, %c0_173, %c0_174] : memref<8x256x128xbf16, #tpu.memory_space<vmem>>, vector<1x256x128xbf16>
    %232 = vector.shape_cast %231 : vector<1x256x128xbf16> to vector<256x128xbf16>
    %cst_175 = arith.constant dense<0.000000e+00> : vector<2x128xf32>
    %233 = tpu.matmul %230, %232, %cst_175 {dimension_numbers = #tpu.dot_dimension_numbers<[1], [0], [0], [1], [0, 0, 1, 1], [], []>} : vector<2x256xbf16>, vector<256x128xbf16>, vector<2x128xf32> -> vector<2x128xf32>
    %234 = arith.addf %201, %233 : vector<2x128xf32>
    %c0_176 = arith.constant 0 : index
    %c0_177 = arith.constant 0 : index
    %c0_178 = arith.constant 0 : index
    %235 = vector.load %arg5[%c0_176, %c0_177, %c0_178] : memref<4x2x256xf32, #tpu.memory_space<vmem>>, vector<1x2x256xf32>
    %236 = vector.shape_cast %235 : vector<1x2x256xf32> to vector<2x256xf32>
    %c7 = arith.constant 7 : index
    %c0_179 = arith.constant 0 : index
    %237 = memref.load %arg2[%c7, %c0_179] : memref<8x4xf32, #tpu.memory_space<smem>>
    %238 = vector.broadcast %237 : f32 to vector<2x256xf32>
    %239 = arith.mulf %236, %238 : vector<2x256xf32>
    %c1_180 = arith.constant 1 : index
    %c0_181 = arith.constant 0 : index
    %c0_182 = arith.constant 0 : index
    %240 = vector.load %arg5[%c1_180, %c0_181, %c0_182] : memref<4x2x256xf32, #tpu.memory_space<vmem>>, vector<1x2x256xf32>
    %241 = vector.shape_cast %240 : vector<1x2x256xf32> to vector<2x256xf32>
    %c7_183 = arith.constant 7 : index
    %c1_184 = arith.constant 1 : index
    %242 = memref.load %arg2[%c7_183, %c1_184] : memref<8x4xf32, #tpu.memory_space<smem>>
    %243 = vector.broadcast %242 : f32 to vector<2x256xf32>
    %244 = arith.mulf %241, %243 : vector<2x256xf32>
    %245 = arith.addf %239, %244 : vector<2x256xf32>
    %c2_185 = arith.constant 2 : index
    %c0_186 = arith.constant 0 : index
    %c0_187 = arith.constant 0 : index
    %246 = vector.load %arg5[%c2_185, %c0_186, %c0_187] : memref<4x2x256xf32, #tpu.memory_space<vmem>>, vector<1x2x256xf32>
    %247 = vector.shape_cast %246 : vector<1x2x256xf32> to vector<2x256xf32>
    %c7_188 = arith.constant 7 : index
    %c2_189 = arith.constant 2 : index
    %248 = memref.load %arg2[%c7_188, %c2_189] : memref<8x4xf32, #tpu.memory_space<smem>>
    %249 = vector.broadcast %248 : f32 to vector<2x256xf32>
    %250 = arith.mulf %247, %249 : vector<2x256xf32>
    %251 = arith.addf %245, %250 : vector<2x256xf32>
    %c3_190 = arith.constant 3 : index
    %c0_191 = arith.constant 0 : index
    %c0_192 = arith.constant 0 : index
    %252 = vector.load %arg5[%c3_190, %c0_191, %c0_192] : memref<4x2x256xf32, #tpu.memory_space<vmem>>, vector<1x2x256xf32>
    %253 = vector.shape_cast %252 : vector<1x2x256xf32> to vector<2x256xf32>
    %c7_193 = arith.constant 7 : index
    %c3_194 = arith.constant 3 : index
    %254 = memref.load %arg2[%c7_193, %c3_194] : memref<8x4xf32, #tpu.memory_space<smem>>
    %255 = vector.broadcast %254 : f32 to vector<2x256xf32>
    %256 = arith.mulf %253, %255 : vector<2x256xf32>
    %257 = arith.addf %251, %256 : vector<2x256xf32>
    %c7_195 = arith.constant 7 : index
    %258 = memref.load %arg3[%c7_195] : memref<8xf32, #tpu.memory_space<smem>>
    %259 = vector.broadcast %258 : f32 to vector<2x256xf32>
    %260 = arith.addf %257, %259 : vector<2x256xf32>
    %cst_196 = arith.constant 0.000000e+00 : f32
    %261 = vector.broadcast %cst_196 : f32 to vector<2x256xf32>
    %262 = arith.maximumf %260, %261 : vector<2x256xf32>
    %263 = arith.truncf %262 : vector<2x256xf32> to vector<2x256xbf16>
    %c7_197 = arith.constant 7 : index
    %c0_198 = arith.constant 0 : index
    %c0_199 = arith.constant 0 : index
    %264 = vector.load %arg6[%c7_197, %c0_198, %c0_199] : memref<8x256x128xbf16, #tpu.memory_space<vmem>>, vector<1x256x128xbf16>
    %265 = vector.shape_cast %264 : vector<1x256x128xbf16> to vector<256x128xbf16>
    %cst_200 = arith.constant dense<0.000000e+00> : vector<2x128xf32>
    %266 = tpu.matmul %263, %265, %cst_200 {dimension_numbers = #tpu.dot_dimension_numbers<[1], [0], [0], [1], [0, 0, 1, 1], [], []>} : vector<2x256xbf16>, vector<256x128xbf16>, vector<2x128xf32> -> vector<2x128xf32>
    %267 = arith.addf %234, %266 : vector<2x128xf32>
    %c0_201 = arith.constant 0 : index
    %c0_202 = arith.constant 0 : index
    %268 = vector.load %arg7[%c0_201, %c0_202] : memref<2x128xf32, #tpu.memory_space<vmem>>, vector<2x128xf32>
    %269 = arith.addf %268, %267 : vector<2x128xf32>
    %c0_203 = arith.constant 0 : index
    %c0_204 = arith.constant 0 : index
    %270 = vector.load %arg7[%c0_203, %c0_204] : memref<2x128xf32, #tpu.memory_space<vmem>>, vector<2x128xf32>
    tpu.vector_store %arg7[%c0_203, %c0_204], %269 {strides = array<i32>} : memref<2x128xf32, #tpu.memory_space<vmem>>, vector<2x128xf32>,
    %c0_i32_205 = arith.constant 0 : i32
    %271 = arith.cmpi eq, %arg1, %c0_i32_205 : i32
    %272 = arith.extui %271 : i1 to i32
    %c0_i32_206 = arith.constant 0 : i32
    %273 = arith.cmpi ne, %272, %c0_i32_206 : i32
    scf.if %273 {
      %c0_207 = arith.constant 0 : index
      %c0_208 = arith.constant 0 : index
      %274 = vector.load %arg7[%c0_207, %c0_208] : memref<2x128xf32, #tpu.memory_space<vmem>>, vector<2x128xf32>
      %c0_209 = arith.constant 0 : index
      %c0_210 = arith.constant 0 : index
      %275 = vector.load %arg4[%c0_209, %c0_210] : memref<1x128xf32, #tpu.memory_space<vmem>>, vector<1x128xf32>
      %276 = vector.broadcast %275 : vector<1x128xf32> to vector<2x128xf32>
      %277 = arith.addf %274, %276 : vector<2x128xf32>
      %c0_211 = arith.constant 0 : index
      %c0_212 = arith.constant 0 : index
      %278 = vector.load %arg7[%c0_211, %c0_212] : memref<2x128xf32, #tpu.memory_space<vmem>>, vector<2x128xf32>
      tpu.vector_store %arg7[%c0_211, %c0_212], %277 {strides = array<i32>} : memref<2x128xf32, #tpu.memory_space<vmem>>, vector<2x128xf32>,
    } else {
    }
    return
  }
  func.func @transform_0(%arg0: i32, %arg1: i32) -> (i32, i32) {
    %c0_i32 = arith.constant 0 : i32
    %c0_i32_0 = arith.constant 0 : i32
    %c0_i32_1 = arith.constant 0 : i32
    return %c0_i32, %c0_i32_0 : i32, i32
  }
  func.func @transform_1(%arg0: i32, %arg1: i32) -> i32 {
    %c0_i32 = arith.constant 0 : i32
    %c0_i32_0 = arith.constant 0 : i32
    return %c0_i32 : i32
  }
  func.func @transform_2(%arg0: i32, %arg1: i32) -> (i32, i32) {
    %c0_i32 = arith.constant 0 : i32
    %c0_i32_0 = arith.constant 0 : i32
    %c0_i32_1 = arith.constant 0 : i32
    return %c0_i32, %c0_i32_0 : i32, i32
  }
  func.func @transform_3(%arg0: i32, %arg1: i32) -> (i32, i32, i32) {
    %c0_i32 = arith.constant 0 : i32
    %c0_i32_0 = arith.constant 0 : i32
    return %c0_i32, %arg0, %arg1 : i32, i32, i32
  }
  func.func @transform_4(%arg0: i32, %arg1: i32) -> (i32, i32, i32) {
    %c0_i32 = arith.constant 0 : i32
    %c0_i32_0 = arith.constant 0 : i32
    %c0_i32_1 = arith.constant 0 : i32
    return %c0_i32, %arg1, %c0_i32_0 : i32, i32, i32
  }
  func.func @transform_5(%arg0: i32, %arg1: i32) -> (i32, i32) {
    %c0_i32 = arith.constant 0 : i32
    %c0_i32_0 = arith.constant 0 : i32
    return %arg0, %c0_i32 : i32, i32
  }
}

</mosaic_0001>

<bundles_post_ra>
// kernel: my_model_forward.1
= control target key start
LH: loop header
LB: loop body
LE: loop exit
PB: predicated region body
PF: predicated region fallthrough
CT: control target
= control target key end

     0   :  { %10 = vsyncpa [#allocation5], 0  ;;  %s2466_s0 = inlined_call_operand.vmem [shape: f32[8,4], index: 0, kind: input, shape index: {}]   ;;  %s2467_s1 = inlined_call_operand.vmem [shape: f32[8], index: 1, kind: input, shape index: {}]   ;;  %s2468_s2 = inlined_call_operand.vmem [shape: f32[1,128], index: 2, kind: input, shape index: {}]   ;;  %s2469_s3 = inlined_call_operand.vmem [shape: f32[4,2,256], index: 3, kind: input, shape index: {}]   ;;  %s2470_s4 = inlined_call_operand.hbm [shape: bf16[8,256,128], index: 4, kind: input, shape index: {}]   ;;  %s2471_s5 = inlined_call_operand.hbm [shape: f32[2,128], index: 5, kind: output, shape index: {}]  }
   0x1   :  { %11 = vsyncpa [#allocation7], 0 }
   0x2   :  { %12 = vsyncpa [#allocation3], 0 }
   0x3   :  { %13 = vsyncpa [#allocation4], 0  ;;  %s20_s20 = sshll.u32 %s2466_s0, 4  ;;  %s30_s23 = sshll.u32 %s2467_s1, 4  ;;  %s21_s20 = int_to_ptr.vmem [resolvable:$true] %s20_s20  ;;  %s31_s23 = int_to_ptr.vmem [resolvable:$true] %s30_s23 }
   0x4   :  { %s2205_s24 = scalar_lea.vmem %s21_s20, 128  ;;  %p2210_p1 = scmp.lt.s32.totalorder %s21_s20, %s21_s20 }
   0x5   :  { %p2206_p0 = scmp.ne.s32.totalorder %s21_s20, %s2205_s24  ;;  %p2211_p2 = scmp.lt.s32.totalorder %s2205_s24, %s2205_s24 }
   0x7   :  { %p2212_p3 = por %p2211_p2, %p2210_p1 }
   0x9   :  { %p2213_p4 = pnand %p2212_p3, %p2206_p0 }
   0xb   :  { %2216 = shalt.err (!%p2213_p4)
}
   0xc   :  { %s2281_s25 = smov [#allocation2]   ;;  %s2217_s26 = scalar_lea.vmem %s31_s23, 16 }
   0xd   :  { %23 = dma.vmem_to_smem %s21_s20, 128, %s2281_s25, [#allocation5]  }
   0xe   :  { %p2218_p5 = scmp.ne.s32.totalorder %s31_s23, %s2217_s26  ;;  %p2222_p6 = scmp.lt.s32.totalorder %s31_s23, %s31_s23 }
   0xf   :  { %p2223_p7 = scmp.lt.s32.totalorder %s2217_s26, %s2217_s26 }
  0x11   :  { %p2224_p8 = por %p2223_p7, %p2222_p6 }
  0x13   :  { %p2225_p9 = pnand %p2224_p8, %p2218_p5 }
  0x15   :  { %2228 = shalt.err (!%p2225_p9)
}
  0x16   :  { %s2282_s0 = smov [#allocation6]   ;;  %s2283_s1 = smov [#allocation8]  }
  0x17   :  { %33 = dma.vmem_to_smem %s31_s23, 16, %s2282_s0, [#allocation7]  }
  0x18   :  { %s43_s27 = sshll.u32 %s2283_s1, 4  ;;  %s2229_s30 = scalar_lea.hbm %s2470_s4, 16384  ;;  %s44_s27 = int_to_ptr.vmem [resolvable:$true] %s43_s27 }
  0x19   :  { %p2230_p10 = scmp.ne.s32.totalorder %s2470_s4, %s2229_s30  ;;  %p2233_p11 = scmp.lt.u32.totalorder %s2229_s30, %s2470_s4 }
  0x1b   :  { %p2235_p12 = pnand %p2233_p11, %p2230_p10 }
  0x1d   :  { %2238 = shalt.err (!%p2235_p12)
}
  0x1e   :  { %s2239_s10 = scalar_lea.vmem %s44_s27, 16384  ;;  %p2244_p0 = scmp.lt.s32.totalorder %s44_s27, %s44_s27 }
  0x1f   :  { %p2240_p13 = scmp.ne.s32.totalorder %s44_s27, %s2239_s10  ;;  %p2245_p1 = scmp.lt.s32.totalorder %s2239_s10, %s2239_s10 }
  0x21   :  { %p2246_p2 = por %p2245_p1, %p2244_p0 }
  0x23   :  { %p2247_p3 = pnand %p2246_p2, %p2240_p13 }
  0x25   :  { %2250 = shalt.err (!%p2247_p3)
}
  0x26   :  { %s2284_s11 = smov 64   ;;  %s2285_s12 = smov 4  }
  0x27   :  { %49 = dma.hbm_to_vmem [thread:$0]  %s2470_s4, 16384, %s44_s27, [#allocation3], %s2284_s11, %s2284_s11, %s2285_s12  }
  0x28   :  { %2273 = dma.done.wait [#allocation5], 128  }
  0x29   :  { %2274 = vsyncadd [#allocation5], 4294967168 }
  0x2a   :  { %2275 = dma.done.wait [#allocation7], 16  }
  0x2b   :  { %2276 = vsyncadd [#allocation7], 4294967280 }
  0x2c   :  { %2277 = dma.done.wait [#allocation3], 16384  }
  0x2d   :  { %2278 = vsyncadd [#allocation3], 4294950912 }
  0x2e   :  { %59 = sfence }
  0x2f   :  { %v2073_v0 = vld [vmem:[#allocation8 + $0xc0] sm:$0xff]   ;;  %v2077_v4 = vld [vmem:[#allocation8 + $0xc8] sm:$0xff]   ;;  %v2081_v8 = vld [vmem:[#allocation8 + $0xd0] sm:$0xff]   ;;  %s1725_s4 = sld [smem:[#allocation2 + $0x80]]  ;;  %s1726_s15 = sld [smem:[#allocation2 + $0x81]]  ;;  %v96_v39 = vlaneseq }
  0x30   :  { %v2074_v1 = vld [vmem:[#allocation8 + $0x40] sm:$0xff]   ;;  %1889 = vmatprep.subr.bf16.mxu0 %v2073_v0  ;;  %v2078_v5 = vld [vmem:[#allocation8 + $0x48] sm:$0xff]   ;;  %v2082_v9 = vld [vmem:[#allocation8 + $0x50] sm:$0xff]   ;;  %s1727_s16 = sld [smem:[#allocation2 + $0x82]]  ;;  %s1728_s19 = sld [smem:[#allocation2 + $0x83]] }
  0x31   :  { %v2075_v2 = vld [vmem:[#allocation8 + $0x80] sm:$0xff]   ;;  %1911 = vmatprep.subr.bf16.mxu1 %v2074_v1  ;;  %v2079_v6 = vld [vmem:[#allocation8 + $0x88] sm:$0xff]   ;;  %v2083_v10 = vld [vmem:[#allocation8 + $0x90] sm:$0xff]   ;;  %s67_s24 = sld [smem:[#allocation2]]  ;;  %s1720_s25 = sld [smem:[#allocation2 + $0x1]]  ;;  %v97_v55 = vshrl.u32 %v96_v39, 7 }
  0x32   :  { %v2076_v3 = vld [vmem:[#allocation8] sm:$0xff]   ;;  %1890 = vmatpush3.bf16.msra.mxu0 %v2075_v2  ;;  %v2080_v7 = vld [vmem:[#allocation8 + $0x8] sm:$0xff]   ;;  %v2084_v11 = vld [vmem:[#allocation8 + $0x10] sm:$0xff]   ;;  %s1722_s26 = sld [smem:[#allocation2 + $0x2]]  ;;  %s1724_s0 = sld [smem:[#allocation2 + $0x3]] }
  0x33   :  { %1912 = vmatpush3.bf16.msra.mxu1 %v2076_v3  ;;  %1891 = vmatprep.subr.bf16.mxu0 %v2077_v4  ;;  %v2085_v12 = vld [vmem:[#allocation8 + $0xd8] sm:$0xff]   ;;  %v2089_v16 = vld [vmem:[#allocation8 + $0xe0] sm:$0xff]   ;;  %v2093_v20 = vld [vmem:[#allocation8 + $0xe8] sm:$0xff]   ;;  %s2352_s1 = sld [smem:[#allocation6 + $0x1]]  ;;  %s88_s29 = sld [smem:[#allocation6]] }
  0x34   :  { %1913 = vmatprep.subr.bf16.mxu1 %v2078_v5  ;;  %v2086_v13 = vld [vmem:[#allocation8 + $0x58] sm:$0xff]   ;;  %v2090_v17 = vld [vmem:[#allocation8 + $0x60] sm:$0xff]   ;;  %v2094_v21 = vld [vmem:[#allocation8 + $0x68] sm:$0xff]   ;;  %v2286_v43 = vmov 1983009808   ;;  %s1762_s30 = sld [smem:[#allocation2 + $0x100]] }
  0x35   :  { %v2087_v14 = vld [vmem:[#allocation8 + $0x98] sm:$0xff]   ;;  %v2091_v18 = vld [vmem:[#allocation8 + $0xa0] sm:$0xff]   ;;  %v2095_v22 = vld [vmem:[#allocation8 + $0xa8] sm:$0xff]   ;;  %v138_v38 = vstv %s1725_s4  ;;  %v141_v41 = vstv %s1726_s15  ;;  %v94_v44 = vunpack.c.l.s4 %v2286_v43  ;;  %s1763_s6 = sld [smem:[#allocation2 + $0x101]]  ;;  %s1764_s7 = sld [smem:[#allocation2 + $0x102]] }
  0x36   :  { %1892 = vmatpush3.bf16.msra.mxu0 %v2079_v6  ;;  %v2088_v15 = vld [vmem:[#allocation8 + $0x18] sm:$0xff]   ;;  %v2092_v19 = vld [vmem:[#allocation8 + $0x20] sm:$0xff]   ;;  %v2096_v23 = vld [vmem:[#allocation8 + $0x28] sm:$0xff]   ;;  %v145_v42 = vstv %s1727_s16  ;;  %v149_v47 = vstv %s1728_s19  ;;  %s1765_s8 = sld [smem:[#allocation2 + $0x103]]  ;;  %s1783_s9 = sld [smem:[#allocation2 + $0x180]] }
  0x37   :  { %1914 = vmatpush3.bf16.msra.mxu1 %v2080_v7  ;;  %1893 = vmatprep.subr.bf16.mxu0 %v2081_v8  ;;  %v2097_v24 = vld [vmem:[#allocation8 + $0xf0] sm:$0xff]   ;;  %v2101_v28 = vld [vmem:[#allocation8 + $0xf8] sm:$0xff]   ;;  %v2340_v32 = vld [vmem:[%s2469_s3] sm:$0xf]  ;;  %v68_v49 = vstv %s67_s24  ;;  %v73_v50 = vstv %s1720_s25  ;;  %v95_v58 = vunpack.c.0.s8 %v94_v44  ;;  %s1784_s10 = sld [smem:[#allocation2 + $0x181]]  ;;  %s2372_s11 = sld [smem:[#allocation2 + $0x182]] }
  0x38   :  { %1915 = vmatprep.subr.bf16.mxu1 %v2082_v9  ;;  %v2098_v25 = vld [vmem:[#allocation8 + $0x70] sm:$0xff]   ;;  %v2102_v29 = vld [vmem:[#allocation8 + $0x78] sm:$0xff]   ;;  %v2345_v33 = vld [vmem:[%s2469_s3 + $0x4] sm:$0xf]  ;;  %v139_v40 = vmul.f32 %v138_v38, %v2340_v32  ;;  %v69_v52 = vmul.f32 %v68_v49, %v2340_v32  ;;  %v79_v54 = vstv %s1722_s26  ;;  %v85_v57 = vstv %s1724_s0  ;;  %s2374_s12 = sld [smem:[#allocation2 + $0x183]]  ;;  %s2376_s13 = sld [smem:[#allocation6 + $0x2]] }
  0x39   :  { %v2099_v26 = vld [vmem:[#allocation8 + $0xb0] sm:$0xff]   ;;  %v2103_v30 = vld [vmem:[#allocation8 + $0xb8] sm:$0xff]   ;;  %v2350_v34 = vld [vmem:[%s2469_s3 + $0x8] sm:$0xf]  ;;  %v142_v45 = vmul.f32 %v2345_v33, %v141_v41  ;;  %v74_v53 = vmul.f32 %v2345_v33, %v73_v50  ;;  %v153_v62 = vstv %s2352_s1  ;;  %v89_v1 = vstv %s88_s29  ;;  %s2379_s14 = sld [smem:[#allocation6 + $0x3]]  ;;  %s1804_s4 = sld [smem:[#allocation2 + $0x200]] }
  0x3a   :  { %1894 = vmatpush3.bf16.msra.mxu0 %v2083_v10  ;;  %v2100_v27 = vld [vmem:[#allocation8 + $0x30] sm:$0xff]   ;;  %v2104_v31 = vld [vmem:[#allocation8 + $0x38] sm:$0xff]   ;;  %v2105_v35 = vld [vmem:[#allocation8 + $0x140] sm:$0xff]   ;;  %v146_v46 = vmul.f32 %v2350_v34, %v145_v42  ;;  %v80_v56 = vmul.f32 %v2350_v34, %v79_v54  ;;  %v2368_v2 = vsub.s32 %v95_v58, %v97_v55  ;;  %v475_v39 = vstv %s1762_s30  ;;  %s1805_s15 = sld [smem:[#allocation2 + $0x201]]  ;;  %s1806_s16 = sld [smem:[#allocation2 + $0x202]] }
  0x3b   :  { %1916 = vmatpush3.bf16.msra.mxu1 %v2084_v11  ;;  %1895 = vmatprep.subr.bf16.mxu0 %v2085_v12  ;;  %v2106_v36 = vld [vmem:[#allocation8 + $0x1c0] sm:$0xff]   ;;  %v2357_v37 = vld [vmem:[%s2469_s3 + $0xc] sm:$0xf]  ;;  %v143_v51 = vadd.f32 %v142_v45, %v139_v40  ;;  %v75_v60 = vadd.f32 %v74_v53, %v69_v52  ;;  %v476_v40 = vmul.f32 %v475_v39, %v2340_v32  ;;  %v478_v41 = vstv %s1763_s6  ;;  %v2148_v39 = vld [vmem:[#allocation8 + $0x290] sm:$0xff]   ;;  %s1807_s17 = sld [smem:[#allocation2 + $0x203]]  ;;  %s1825_s18 = sld [smem:[#allocation2 + $0x280]] }
  0x3c   :  { %1917 = vmatprep.subr.bf16.mxu1 %v2086_v13  ;;  %v150_v48 = vmul.f32 %v2357_v37, %v149_v47  ;;  %v86_v61 = vmul.f32 %v2357_v37, %v85_v57  ;;  %v2125_v38 = vld [vmem:[#allocation8 + $0x168] sm:$0xff]   ;;  %v482_v42 = vstv %s1764_s7  ;;  %v479_v44 = vmul.f32 %v2345_v33, %v478_v41  ;;  %v2151_v41 = vld [vmem:[#allocation8 + $0x218] sm:$0xff]   ;;  %s1826_s19 = sld [smem:[#allocation2 + $0x281]]  ;;  %s1827_s20 = sld [smem:[#allocation2 + $0x282]] }
  0x3d   :  { %v147_v59 = vadd.f32 %v146_v46, %v143_v51  ;;  %v81_v0 = vadd.f32 %v80_v56, %v75_v60  ;;  %v2126_v43 = vld [vmem:[#allocation8 + $0x1e8] sm:$0xff]   ;;  %v483_v45 = vmul.f32 %v2350_v34, %v482_v42  ;;  %v486_v46 = vstv %s1765_s8  ;;  %v2129_v51 = vld [vmem:[#allocation8 + $0x170] sm:$0xff]   ;;  %v2152_v42 = vld [vmem:[#allocation8 + $0x298] sm:$0xff]   ;;  %s2394_s21 = sld [smem:[#allocation6 + $0x4]]  ;;  %s2396_s22 = sld [smem:[#allocation2 + $0x283]] }
  0x3e   :  { %1896 = vmatpush3.bf16.msra.mxu0 %v2087_v14  ;;  %v2107_v14 = vld [vmem:[#allocation8 + $0x100] sm:$0xff]   ;;  %v2127_v47 = vld [vmem:[#allocation8 + $0x128] sm:$0xff]   ;;  %v677_v49 = vstv %s1783_s9  ;;  %v680_v50 = vstv %s1784_s10  ;;  %v480_v52 = vadd.f32 %v479_v44, %v476_v40  ;;  %v684_v55 = vstv %s2372_s11  ;;  %v2150_v40 = vld [vmem:[#allocation8 + $0x2d8] sm:$0xff]   ;;  %s2400_s23 = sld [smem:[#allocation6 + $0x5]]  ;;  %s1846_s24 = sld [smem:[#allocation2 + $0x300]] }
  0x3f   :  { %1918 = vmatpush3.bf16.msra.mxu1 %v2088_v15  ;;  %1897 = vmatprep.subr.bf16.mxu0 %v2089_v16  ;;  %v151_v63 = vadd.f32 %v150_v48, %v147_v59  ;;  %v87_v4 = vadd.f32 %v86_v61, %v81_v0  ;;  %v2109_v16 = vld [vmem:[#allocation8 + $0x148] sm:$0xff]   ;;  %v487_v48 = vmul.f32 %v2357_v37, %v486_v46  ;;  %v688_v58 = vstv %s2374_s12  ;;  %v2130_v59 = vld [vmem:[#allocation8 + $0x1f0] sm:$0xff]   ;;  %v2154_v44 = vld [vmem:[#allocation8 + $0x2e0] sm:$0xff]   ;;  %s1847_s25 = sld [smem:[#allocation2 + $0x301]]  ;;  %s2413_s26 = sld [smem:[#allocation2 + $0x302]] }
  0x40   :  { %1919 = vmatprep.subr.bf16.mxu1 %v2090_v17  ;;  %v678_v53 = vmul.f32 %v677_v49, %v2340_v32  ;;  %v681_v54 = vmul.f32 %v2345_v33, %v680_v50  ;;  %v2128_v56 = vld [vmem:[#allocation8 + $0x1a8] sm:$0xff]   ;;  %v685_v57 = vmul.f32 %v2350_v34, %v684_v55  ;;  %v484_v60 = vadd.f32 %v483_v45, %v480_v52  ;;  %v2155_v45 = vld [vmem:[#allocation8 + $0x220] sm:$0xff]   ;;  %s2415_s0 = sld [smem:[#allocation2 + $0x303]]  ;;  %s2417_s1 = sld [smem:[#allocation2 + $0x380]] }
  0x41   :  { %v154_v3 = vadd.f32 %v153_v62, %v151_v63  ;;  %v90_v6 = vadd.f32 %v89_v1, %v87_v4  ;;  %v689_v62 = vmul.f32 %v2357_v37, %v688_v58  ;;  %v2131_v63 = vld [vmem:[#allocation8 + $0x130] sm:$0xff]   ;;  %v490_v0 = vstv %s2376_s13  ;;  %v2133_v1 = vld [vmem:[#allocation8 + $0x178] sm:$0xff]   ;;  %v2156_v46 = vld [vmem:[#allocation8 + $0x2a0] sm:$0xff]   ;;  %s2419_s27 = sld [smem:[#allocation2 + $0x381]]  ;;  %s2421_s28 = sld [smem:[#allocation2 + $0x382]] }
  0x42   :  { %1898 = vmatpush3.bf16.msra.mxu0 %v2091_v18  ;;  %v2108_v18 = vld [vmem:[#allocation8 + $0x180] sm:$0xff]   ;;  %v682_v61 = vadd.f32 %v681_v54, %v678_v53  ;;  %v882_v49 = vstv %s1805_s15  ;;  %v886_v52 = vstv %s1806_s16  ;;  %v890_v53 = vstv %s1807_s17  ;;  %v2158_v54 = vld [vmem:[#allocation8 + $0x2e8] sm:$0xff]   ;;  %s2423_s29 = sld [smem:[#allocation6 + $0x6]]  ;;  %s2425_s30 = sld [smem:[#allocation2 + $0x383]] }
  0x43   :  { %1920 = vmatpush3.bf16.msra.mxu1 %v2092_v19  ;;  %1899 = vmatprep.subr.bf16.mxu0 %v2093_v20  ;;  %v155_v5 = vmax.f32 %v154_v3, 0.0  ;;  %v91_v8 = vmax.f32 %v90_v6, 0.0  ;;  %v2110_v19 = vld [vmem:[#allocation8 + $0x1c8] sm:$0xff]   ;;  %v488_v3 = vadd.f32 %v487_v48, %v484_v60  ;;  %v692_v6 = vstv %s2379_s14  ;;  %s2435_s10 = sld [smem:[#allocation6 + $0x7]]  ;;  %s2288_s15 = smov [#allocation9]  }
  0x44   :  { %1921 = vmatprep.subr.bf16.mxu1 %v2094_v21  ;;  %v2111_v20 = vld [vmem:[#allocation8 + $0x108] sm:$0xff]   ;;  %v2113_v21 = vld [vmem:[#allocation8 + $0x150] sm:$0xff]   ;;  %v686_v4 = vadd.f32 %v685_v57, %v682_v61  ;;  %v879_v48 = vstv %s1804_s4  ;;  %v887_v55 = vmul.f32 %v2350_v34, %v886_v52  ;;  %v1081_v57 = vstv %s1825_s18  ;;  %s1708_s16 = sshll.u32 %s2288_s15, 4  ;;  %s1709_s16 = int_to_ptr.vmem [resolvable:$true] %s1708_s16 }
  0x45   :  { %v163_v7 = vrot.slane %v155_v5, %v2368_v2  ;;  %v99_v10 = vrot.slane %v91_v8, %v2368_v2  ;;  %v2132_v5 = vld [vmem:[#allocation8 + $0x1b0] sm:$0xff]   ;;  %v491_v8 = vadd.f32 %v490_v0, %v488_v3  ;;  %v880_v50 = vmul.f32 %v879_v48, %v2340_v32  ;;  %v2159_v58 = vld [vmem:[#allocation8 + $0x228] sm:$0xff]   ;;  %v2184_v48 = vld [vmem:[#allocation8 + $0x398] sm:$0xff]   ;;  %s2251_s17 = scalar_lea.vmem %s1709_s16, 32  ;;  %p2256_p5 = scmp.lt.s32.totalorder %s1709_s16, %s1709_s16 }
  0x46   :  { %1900 = vmatpush3.bf16.msra.mxu0 %v2095_v22  ;;  %v2112_v22 = vld [vmem:[#allocation8 + $0x188] sm:$0xff]   ;;  %v1082_v60 = vmul.f32 %v1081_v57, %v2340_v32  ;;  %v1084_v61 = vstv %s1826_s19  ;;  %v1092_v3 = vstv %s2396_s22  ;;  %v2163_v32 = vld [vmem:[#allocation8 + $0x230] sm:$0xff]   ;;  %v1283_v52 = vstv %s1846_s24  ;;  %v2202_v57 = vld [vmem:[%s2469_s3 + $0x4] sm:$0xf]  ;;  %p2252_p4 = scmp.ne.s32.totalorder %s1709_s16, %s2251_s17  ;;  %p2257_p6 = scmp.lt.s32.totalorder %s2251_s17, %s2251_s17 }
  0x47   :  { %1922 = vmatpush3.bf16.msra.mxu1 %v2096_v23  ;;  %1901 = vmatprep.subr.bf16.mxu0 %v2097_v24  ;;  %v164_v9 = vcombine.high %v163_v7, %v163_v7  ;;  %v167_v11 = vpack.c.bf16 %v163_v7, %v163_v7  ;;  %v100_v13 = vcombine.high %v99_v10, %v99_v10  ;;  %v2114_v23 = vld [vmem:[#allocation8 + $0x1d0] sm:$0xff]   ;;  %v2134_v7 = vld [vmem:[#allocation8 + $0x1f8] sm:$0xff]  }
  0x48   :  { %1923 = vmatprep.subr.bf16.mxu1 %v2098_v25  ;;  %v103_v15 = vpack.c.bf16 %v99_v10, %v99_v10  ;;  %v2115_v24 = vld [vmem:[#allocation8 + $0x110] sm:$0xff]   ;;  %v2117_v25 = vld [vmem:[#allocation8 + $0x158] sm:$0xff]   ;;  %v1085_v0 = vmul.f32 %v2345_v33, %v1084_v61  ;;  %v2190_v61 = vld [vmem:[#allocation8 + $0x3e8] sm:$0xff]   ;;  %p2258_p7 = por %p2257_p6, %p2256_p5 }
  0x49   :  { %v168_v12 = vpack.c.bf16 %v164_v9, %v164_v9  ;;  %v104_v17 = vpack.c.bf16 %v100_v13, %v100_v13  ;;  %v690_v9 = vadd.f32 %v689_v62, %v686_v4  ;;  %v2135_v10 = vld [vmem:[#allocation8 + $0x138] sm:$0xff]   ;;  %v2137_v13 = vld [vmem:[#allocation8 + $0x240] sm:$0xff]   ;;  %v1088_v62 = vstv %s1827_s20  ;;  %v2160_v4 = vld [vmem:[#allocation8 + $0x2a8] sm:$0xff]  }
  0x4a   :  { %1902 = vmatpush3.bf16.msra.mxu0 %v2099_v26  ;;  %v2116_v26 = vld [vmem:[#allocation8 + $0x190] sm:$0xff]   ;;  %p2259_p8 = pnand %p2258_p7, %p2252_p4 }
  0x4b   :  { %1924 = vmatpush3.bf16.msra.mxu1 %v2100_v27  ;;  %1903 = vmatprep.subr.bf16.mxu0 %v2101_v28  ;;  %v2118_v27 = vld [vmem:[#allocation8 + $0x1d8] sm:$0xff]  }
  0x4c   :  { %1925 = vmatprep.subr.bf16.mxu1 %v2102_v29  ;;  %330 = vmatprep.mubr.bf16.mxu0 %v168_v12  ;;  %v2119_v28 = vld [vmem:[#allocation8 + $0x118] sm:$0xff]   ;;  %v693_v12 = vadd.f32 %v692_v6, %v690_v9  ;;  %v2162_v6 = vld [vmem:[#allocation8 + $0x2f0] sm:$0xff]   ;;  %v1093_v9 = vmul.f32 %v2357_v37, %v1092_v3 }
  0x4d   :  { %466 = vmatprep.mubr.bf16.mxu1 %v104_v17  ;;  %v2120_v29 = vld [vmem:[#allocation8 + $0x198] sm:$0xff]   ;;  %v2138_v17 = vld [vmem:[#allocation8 + $0x2c0] sm:$0xff]  }
  0x4e   :  { %1904 = vmatpush3.bf16.msra.mxu0 %v2103_v30  ;;  %v2121_v30 = vld [vmem:[#allocation8 + $0x160] sm:$0xff]  }
  0x4f   :  { %1926 = vmatpush3.bf16.msra.mxu1 %v2104_v31  ;;  %1933 = vmatprep.subr.bf16.mxu0 %v2105_v35  ;;  %v2122_v31 = vld [vmem:[#allocation8 + $0x1e0] sm:$0xff]  }
  0x50   :  { %1955 = vmatprep.subr.bf16.mxu1 %v2106_v36  ;;  %v2123_v35 = vld [vmem:[#allocation8 + $0x120] sm:$0xff]  }
  0x51   :  { %331 = vmatmul.mubr.bf16.vlgmr.msra.gmra.mrb[0].mxu0 %v167_v11  ;;  %v2124_v36 = vld [vmem:[#allocation8 + $0x1a0] sm:$0xff]   ;;  %v492_v11 = vmax.f32 %v491_v8, 0.0  ;;  %v1086_v8 = vadd.f32 %v1085_v0, %v1082_v60  ;;  %v1294_v60 = vstv %s2415_s0 }
  0x52   :  { %1934 = vmatpush3.bf16.msra.mxu0 %v2107_v14  ;;  %467 = vmatmul.mubr.bf16.vlgmr.msra.gmra.mrb[0].mxu1 %v103_v15  ;;  %v2136_v14 = vld [vmem:[#allocation8 + $0x1b8] sm:$0xff]  }
  0x53   :  { %1935 = vmatprep.subr.bf16.mxu0 %v2109_v16  ;;  %1956 = vmatpush3.bf16.msra.mxu1 %v2108_v18  ;;  %v500_v15 = vrot.slane %v492_v11, %v2368_v2  ;;  %v694_v16 = vmax.f32 %v693_v12, 0.0  ;;  %v2165_v11 = vld [vmem:[#allocation8 + $0x278] sm:$0xff]  }
  0x54   :  { %1957 = vmatprep.subr.bf16.mxu1 %v2110_v19 }
  0x55   :  { %v501_v18 = vcombine.high %v500_v15, %v500_v15  ;;  %v702_v19 = vrot.slane %v694_v16, %v2368_v2  ;;  %v2167_v16 = vld [vmem:[#allocation8 + $0x238] sm:$0xff]  }
  0x56   :  { %1936 = vmatpush3.bf16.msra.mxu0 %v2111_v20  ;;  %v504_v20 = vpack.c.bf16 %v500_v15, %v500_v15 }
  0x57   :  { %1937 = vmatprep.subr.bf16.mxu0 %v2113_v21  ;;  %1958 = vmatpush3.bf16.msra.mxu1 %v2112_v22  ;;  %v505_v21 = vpack.c.bf16 %v501_v18, %v501_v18  ;;  %v703_v22 = vcombine.high %v702_v19, %v702_v19 }
  0x58   :  { %1959 = vmatprep.subr.bf16.mxu1 %v2114_v23  ;;  %v2139_v23 = vld [vmem:[#allocation8 + $0x200] sm:$0xff]  }
  0x59   :  { %667 = vmatprep.mubr.bf16.mxu0 %v505_v21 }
  0x5a   :  { %1938 = vmatpush3.bf16.msra.mxu0 %v2115_v24  ;;  %v706_v24 = vpack.c.bf16 %v702_v19, %v702_v19  ;;  %v2169_v19 = vld [vmem:[#allocation8 + $0x340] sm:$0xff]  }
  0x5b   :  { %1939 = vmatprep.subr.bf16.mxu0 %v2117_v25  ;;  %1960 = vmatpush3.bf16.msra.mxu1 %v2116_v26  ;;  %v2141_v25 = vld [vmem:[#allocation8 + $0x248] sm:$0xff]   ;;  %v707_v26 = vpack.c.bf16 %v703_v22, %v703_v22  ;;  %v2170_v22 = vld [vmem:[#allocation8 + $0x3c0] sm:$0xff]  }
  0x5c   :  { %1961 = vmatprep.subr.bf16.mxu1 %v2118_v27  ;;  %v2140_v27 = vld [vmem:[#allocation8 + $0x280] sm:$0xff]  }
  0x5d   :  { %869 = vmatprep.mubr.bf16.mxu1 %v707_v26 }
  0x5e   :  { %1940 = vmatpush3.bf16.msra.mxu0 %v2119_v28  ;;  %v2142_v28 = vld [vmem:[#allocation8 + $0x2c8] sm:$0xff]  }
  0x5f   :  { %1941 = vmatprep.subr.bf16.mxu0 %v2121_v30  ;;  %1962 = vmatpush3.bf16.msra.mxu1 %v2120_v29  ;;  %v2143_v29 = vld [vmem:[#allocation8 + $0x208] sm:$0xff]   ;;  %v2145_v30 = vld [vmem:[#allocation8 + $0x250] sm:$0xff]  }
  0x60   :  { %1963 = vmatprep.subr.bf16.mxu1 %v2122_v31  ;;  %v2144_v31 = vld [vmem:[#allocation8 + $0x288] sm:$0xff]  }
  0x62   :  { %1942 = vmatpush3.bf16.msra.mxu0 %v2123_v35  ;;  %v2146_v35 = vld [vmem:[#allocation8 + $0x2d0] sm:$0xff]  }
  0x63   :  { %1943 = vmatprep.subr.bf16.mxu0 %v2125_v38  ;;  %1964 = vmatpush3.bf16.msra.mxu1 %v2124_v36  ;;  %v2147_v36 = vld [vmem:[#allocation8 + $0x210] sm:$0xff]   ;;  %v2149_v38 = vld [vmem:[#allocation8 + $0x258] sm:$0xff]  }
  0x64   :  { %1965 = vmatprep.subr.bf16.mxu1 %v2126_v43  ;;  %v2153_v43 = vld [vmem:[#allocation8 + $0x260] sm:$0xff]  }
  0x66   :  { %1944 = vmatpush3.bf16.msra.mxu0 %v2127_v47  ;;  %v2157_v47 = vld [vmem:[#allocation8 + $0x268] sm:$0xff]  }
  0x67   :  { %1945 = vmatprep.subr.bf16.mxu0 %v2129_v51  ;;  %1966 = vmatpush3.bf16.msra.mxu1 %v2128_v56  ;;  %v883_v51 = vmul.f32 %v2345_v33, %v882_v49  ;;  %v891_v56 = vmul.f32 %v2357_v37, %v890_v53  ;;  %v2164_v33 = vld [vmem:[#allocation8 + $0x2b0] sm:$0xff]   ;;  %v2168_v37 = vld [vmem:[#allocation8 + $0x2b8] sm:$0xff]   ;;  %v2186_v49 = vld [vmem:[#allocation8 + $0x3e0] sm:$0xff]   ;;  %v1286_v53 = vstv %s1847_s25 }
  0x68   :  { %1967 = vmatprep.subr.bf16.mxu1 %v2130_v59 }
  0x69   :  { %v884_v59 = vadd.f32 %v883_v51, %v880_v50  ;;  %v2187_v50 = vld [vmem:[#allocation8 + $0x320] sm:$0xff]   ;;  %v2189_v51 = vld [vmem:[#allocation8 + $0x368] sm:$0xff]  }
  0x6a   :  { %1946 = vmatpush3.bf16.msra.mxu0 %v2131_v63  ;;  %v2161_v63 = vld [vmem:[#allocation8 + $0x270] sm:$0xff]  }
  0x6b   :  { %1947 = vmatprep.subr.bf16.mxu0 %v2133_v1  ;;  %1968 = vmatpush3.bf16.msra.mxu1 %v2132_v5  ;;  %v1089_v1 = vmul.f32 %v2350_v34, %v1088_v62  ;;  %v888_v5 = vadd.f32 %v887_v55, %v884_v59  ;;  %v2201_v55 = vld [vmem:[%s2469_s3] sm:$0xf]  ;;  %v1290_v59 = vstv %s2413_s26  ;;  %v2191_v62 = vld [vmem:[#allocation8 + $0x328] sm:$0xff]  }
  0x6c   :  { %1969 = vmatprep.subr.bf16.mxu1 %v2134_v7  ;;  %v894_v7 = vstv %s2394_s21 }
  0x6d   :  { %v1090_v12 = vadd.f32 %v1089_v1, %v1086_v8  ;;  %v2204_v1 = vld [vmem:[%s2469_s3 + $0xc] sm:$0xf]  ;;  %v1488_v8 = vstv %s2419_s27 }
  0x6e   :  { %1948 = vmatpush3.bf16.msra.mxu0 %v2135_v10  ;;  %v892_v10 = vadd.f32 %v891_v56, %v888_v5  ;;  %v1284_v56 = vmul.f32 %v2201_v55, %v1283_v52  ;;  %v1295_v3 = vmul.f32 %v2204_v1, %v1294_v60  ;;  %v2193_v5 = vld [vmem:[#allocation8 + $0x370] sm:$0xff]  }
  0x6f   :  { %1977 = vmatprep.subr.bf16.mxu0 %v2137_v13  ;;  %1970 = vmatpush3.bf16.msra.mxu1 %v2136_v14  ;;  %v1096_v13 = vstv %s2400_s23  ;;  %v2166_v14 = vld [vmem:[#allocation8 + $0x2f8] sm:$0xff]   ;;  %v1094_v15 = vadd.f32 %v1093_v9, %v1090_v12  ;;  %v1492_v9 = vstv %s2421_s28  ;;  %v2192_v12 = vld [vmem:[#allocation8 + $0x3a8] sm:$0xff]  }
  0x70   :  { %1999 = vmatprep.subr.bf16.mxu1 %v2138_v17  ;;  %v895_v34 = vadd.f32 %v894_v7, %v892_v10 }
  0x71   :  { %668 = vmatmul.mubr.bf16.vlgmr.msra.gmra.mrb[4].mxu0 %v504_v20  ;;  %v1097_v18 = vadd.f32 %v1096_v13, %v1094_v15  ;;  %v2195_v13 = vld [vmem:[#allocation8 + $0x330] sm:$0xff]  }
  0x72   :  { %1978 = vmatpush3.bf16.msra.mxu0 %v2139_v23  ;;  %870 = vmatmul.mubr.bf16.vlgmr.msra.gmra.mrb[4].mxu1 %v706_v24  ;;  %v896_v17 = vmax.f32 %v895_v34, 0.0  ;;  %v2194_v34 = vld [vmem:[#allocation8 + $0x3f0] sm:$0xff]  }
  0x73   :  { %1979 = vmatprep.subr.bf16.mxu0 %v2141_v25  ;;  %2000 = vmatpush3.bf16.msra.mxu1 %v2140_v27  ;;  %v1098_v21 = vmax.f32 %v1097_v18, 0.0  ;;  %v2171_v27 = vld [vmem:[#allocation8 + $0x300] sm:$0xff]  }
  0x74   :  { %2001 = vmatprep.subr.bf16.mxu1 %v2142_v28  ;;  %v904_v20 = vrot.slane %v896_v17, %v2368_v2  ;;  %v2197_v17 = vld [vmem:[#allocation8 + $0x378] sm:$0xff]  }
  0x75   :  { %v1106_v24 = vrot.slane %v1098_v21, %v2368_v2  ;;  %v1500_v21 = vstv %s2435_s10 }
  0x76   :  { %1980 = vmatpush3.bf16.msra.mxu0 %v2143_v29  ;;  %v905_v23 = vcombine.high %v904_v20, %v904_v20  ;;  %v908_v25 = vpack.c.bf16 %v904_v20, %v904_v20  ;;  %v2173_v29 = vld [vmem:[#allocation8 + $0x348] sm:$0xff]  }
  0x77   :  { %1981 = vmatprep.subr.bf16.mxu0 %v2145_v30  ;;  %2002 = vmatpush3.bf16.msra.mxu1 %v2144_v31  ;;  %v1107_v28 = vcombine.high %v1106_v24, %v1106_v24  ;;  %v1110_v30 = vpack.c.bf16 %v1106_v24, %v1106_v24  ;;  %v2172_v31 = vld [vmem:[#allocation8 + $0x380] sm:$0xff]  }
  0x78   :  { %2003 = vmatprep.subr.bf16.mxu1 %v2146_v35  ;;  %v909_v26 = vpack.c.bf16 %v905_v23, %v905_v23  ;;  %v2199_v23 = vld [vmem:[#allocation8 + $0x338] sm:$0xff]  }
  0x79   :  { %v1111_v35 = vpack.c.bf16 %v1107_v28, %v1107_v28 }
  0x7a   :  { %1982 = vmatpush3.bf16.msra.mxu0 %v2147_v36  ;;  %1071 = vmatprep.mubr.bf16.mxu0 %v909_v26  ;;  %v2174_v36 = vld [vmem:[#allocation8 + $0x3c8] sm:$0xff]  }
  0x7b   :  { %1983 = vmatprep.subr.bf16.mxu0 %v2149_v38  ;;  %2004 = vmatpush3.bf16.msra.mxu1 %v2148_v39  ;;  %v2175_v38 = vld [vmem:[#allocation8 + $0x308] sm:$0xff]   ;;  %v2177_v39 = vld [vmem:[#allocation8 + $0x350] sm:$0xff]  }
  0x7c   :  { %2005 = vmatprep.subr.bf16.mxu1 %v2150_v40  ;;  %1273 = vmatprep.mubr.bf16.mxu1 %v1111_v35  ;;  %v2176_v40 = vld [vmem:[#allocation8 + $0x388] sm:$0xff]  }
  0x7e   :  { %1984 = vmatpush3.bf16.msra.mxu0 %v2151_v41  ;;  %v2178_v41 = vld [vmem:[#allocation8 + $0x3d0] sm:$0xff]  }
  0x7f   :  { %1985 = vmatprep.subr.bf16.mxu0 %v2153_v43  ;;  %2006 = vmatpush3.bf16.msra.mxu1 %v2152_v42  ;;  %v2179_v42 = vld [vmem:[#allocation8 + $0x310] sm:$0xff]   ;;  %v2181_v43 = vld [vmem:[#allocation8 + $0x358] sm:$0xff]  }
  0x80   :  { %2007 = vmatprep.subr.bf16.mxu1 %v2154_v44  ;;  %v2180_v44 = vld [vmem:[#allocation8 + $0x390] sm:$0xff]  }
  0x82   :  { %1986 = vmatpush3.bf16.msra.mxu0 %v2155_v45  ;;  %v2182_v45 = vld [vmem:[#allocation8 + $0x3d8] sm:$0xff]  }
  0x83   :  { %1987 = vmatprep.subr.bf16.mxu0 %v2157_v47  ;;  %2008 = vmatpush3.bf16.msra.mxu1 %v2156_v46  ;;  %v2183_v46 = vld [vmem:[#allocation8 + $0x318] sm:$0xff]   ;;  %v2185_v47 = vld [vmem:[#allocation8 + $0x360] sm:$0xff]  }
  0x84   :  { %2009 = vmatprep.subr.bf16.mxu1 %v2158_v54  ;;  %v2188_v54 = vld [vmem:[#allocation8 + $0x3a0] sm:$0xff]  }
  0x86   :  { %1988 = vmatpush3.bf16.msra.mxu0 %v2159_v58  ;;  %v1287_v58 = vmul.f32 %v2202_v57, %v1286_v53 }
  0x87   :  { %1989 = vmatprep.subr.bf16.mxu0 %v2161_v63  ;;  %2010 = vmatpush3.bf16.msra.mxu1 %v2160_v4  ;;  %v2203_v63 = vld [vmem:[%s2469_s3 + $0x8] sm:$0xf]  ;;  %v1485_v4 = vstv %s2417_s1 }
  0x88   :  { %2011 = vmatprep.subr.bf16.mxu1 %v2162_v6  ;;  %v1291_v0 = vmul.f32 %v2203_v63, %v1290_v59  ;;  %v1288_v6 = vadd.f32 %v1287_v58, %v1284_v56  ;;  %v1486_v7 = vmul.f32 %v2201_v55, %v1485_v4  ;;  %v1493_v10 = vmul.f32 %v2203_v63, %v1492_v9 }
  0x8a   :  { %1990 = vmatpush3.bf16.msra.mxu0 %v2163_v32  ;;  %v1489_v32 = vmul.f32 %v2202_v57, %v1488_v8 }
  0x8b   :  { %1991 = vmatprep.subr.bf16.mxu0 %v2165_v11  ;;  %2012 = vmatpush3.bf16.msra.mxu1 %v2164_v33  ;;  %v1496_v11 = vstv %s2425_s30  ;;  %v1292_v33 = vadd.f32 %v1291_v0, %v1288_v6 }
  0x8c   :  { %2013 = vmatprep.subr.bf16.mxu1 %v2166_v14  ;;  %v1298_v14 = vstv %s2423_s29  ;;  %v1490_v15 = vadd.f32 %v1489_v32, %v1486_v7 }
  0x8d   :  { %v1296_v18 = vadd.f32 %v1295_v3, %v1292_v33 }
  0x8e   :  { %1992 = vmatpush3.bf16.msra.mxu0 %v2167_v16  ;;  %v1497_v16 = vmul.f32 %v2204_v1, %v1496_v11 }
  0x8f   :  { %2021 = vmatprep.subr.bf16.mxu0 %v2169_v19  ;;  %2014 = vmatpush3.bf16.msra.mxu1 %v2168_v37  ;;  %v1494_v19 = vadd.f32 %v1493_v10, %v1490_v15  ;;  %v2196_v37 = vld [vmem:[#allocation8 + $0x3b0] sm:$0xff]   ;;  %v1299_v20 = vadd.f32 %v1298_v14, %v1296_v18 }
  0x90   :  { %2043 = vmatprep.subr.bf16.mxu1 %v2170_v22  ;;  %v2198_v22 = vld [vmem:[#allocation8 + $0x3f8] sm:$0xff]  }
  0x91   :  { %1072 = vmatmul.mubr.bf16.vlgmr.msra.gmra.mrb[8].mxu0 %v908_v25  ;;  %v1498_v24 = vadd.f32 %v1497_v16, %v1494_v19  ;;  %v1300_v25 = vmax.f32 %v1299_v20, 0.0 }
  0x92   :  { %2022 = vmatpush3.bf16.msra.mxu0 %v2171_v27  ;;  %1274 = vmatmul.mubr.bf16.vlgmr.msra.gmra.mrb[8].mxu1 %v1110_v30  ;;  %v2200_v27 = vld [vmem:[#allocation8 + $0x3b8] sm:$0xff]  }
  0x93   :  { %2023 = vmatprep.subr.bf16.mxu0 %v2173_v29  ;;  %2044 = vmatpush3.bf16.msra.mxu1 %v2172_v31  ;;  %v1501_v26 = vadd.f32 %v1500_v21, %v1498_v24  ;;  %v1308_v28 = vrot.slane %v1300_v25, %v2368_v2 }
  0x94   :  { %2045 = vmatprep.subr.bf16.mxu1 %v2174_v36 }
  0x95   :  { %v1502_v29 = vmax.f32 %v1501_v26, 0.0  ;;  %v1309_v30 = vcombine.high %v1308_v28, %v1308_v28  ;;  %v1312_v35 = vpack.c.bf16 %v1308_v28, %v1308_v28 }
  0x96   :  { %2024 = vmatpush3.bf16.msra.mxu0 %v2175_v38 }
  0x97   :  { %2025 = vmatprep.subr.bf16.mxu0 %v2177_v39  ;;  %2046 = vmatpush3.bf16.msra.mxu1 %v2176_v40  ;;  %v1510_v31 = vrot.slane %v1502_v29, %v2368_v2  ;;  %v1313_v36 = vpack.c.bf16 %v1309_v30, %v1309_v30 }
  0x98   :  { %2047 = vmatprep.subr.bf16.mxu1 %v2178_v41  ;;  %v2287_v41 = vmov 0.0  }
  0x99   :  { %v1511_v38 = vcombine.high %v1510_v31, %v1510_v31  ;;  %1475 = vmatprep.mubr.bf16.mxu0 %v1313_v36  ;;  %v1514_v39 = vpack.c.bf16 %v1510_v31, %v1510_v31  ;;  %65 = vst [vmem:[#allocation9] sm:$0x3] %v2287_v41 }
  0x9a   :  { %2026 = vmatpush3.bf16.msra.mxu0 %v2179_v42 }
  0x9b   :  { %2027 = vmatprep.subr.bf16.mxu0 %v2181_v43  ;;  %2048 = vmatpush3.bf16.msra.mxu1 %v2180_v44  ;;  %v1515_v40 = vpack.c.bf16 %v1511_v38, %v1511_v38 }
  0x9c   :  { %2049 = vmatprep.subr.bf16.mxu1 %v2182_v45 }
  0x9d   :  { %1677 = vmatprep.mubr.bf16.mxu1 %v1515_v40 }
  0x9e   :  { %2028 = vmatpush3.bf16.msra.mxu0 %v2183_v46 }
  0x9f   :  { %2029 = vmatprep.subr.bf16.mxu0 %v2185_v47  ;;  %2050 = vmatpush3.bf16.msra.mxu1 %v2184_v48 }
  0xa0   :  { %2051 = vmatprep.subr.bf16.mxu1 %v2186_v49 }
  0xa2   :  { %2030 = vmatpush3.bf16.msra.mxu0 %v2187_v50 }
  0xa3   :  { %2031 = vmatprep.subr.bf16.mxu0 %v2189_v51  ;;  %2052 = vmatpush3.bf16.msra.mxu1 %v2188_v54 }
  0xa4   :  { %2053 = vmatprep.subr.bf16.mxu1 %v2190_v61 }
  0xa6   :  { %2032 = vmatpush3.bf16.msra.mxu0 %v2191_v62 }
  0xa7   :  { %2033 = vmatprep.subr.bf16.mxu0 %v2193_v5  ;;  %2054 = vmatpush3.bf16.msra.mxu1 %v2192_v12 }
  0xa8   :  { %2055 = vmatprep.subr.bf16.mxu1 %v2194_v34 }
  0xaa   :  { %2034 = vmatpush3.bf16.msra.mxu0 %v2195_v13 }
  0xab   :  { %2035 = vmatprep.subr.bf16.mxu0 %v2197_v17  ;;  %2056 = vmatpush3.bf16.msra.mxu1 %v2196_v37  ;;  %v1686_v37 = vld [vmem:[#allocation9] sm:$0x3] }
  0xac   :  { %2057 = vmatprep.subr.bf16.mxu1 %v2198_v22 }
  0xae   :  { %2036 = vmatpush3.bf16.msra.mxu0 %v2199_v23  ;;  %v1888_v23 = vld [vmem:[%s2468_s2] ss:$0 sm:$0xff] }
  0xaf   :  { %2058 = vmatpush3.bf16.msra.mxu1 %v2200_v27 }
  0xb1   :  { %1476 = vmatmul.mubr.bf16.vlgmr.msra.gmra.mrb[12].mxu0 %v1312_v35 }
  0xb2   :  { %1678 = vmatmul.mubr.bf16.vlgmr.msra.gmra.mrb[12].mxu1 %v1514_v39 }
 0x124   :  { %v1905_v42 = vpop.f32.mrb[0].mxu0 }
 0x125   :  { %v1906_v43 = vpop.f32.mrb[1].mxu0  ;;  %v1927_v44 = vpop.f32.mrb[0].mxu1 }
 0x126   :  { %v1907_v45 = vadd.f32 %v1906_v43, %v1905_v42  ;;  %v1908_v46 = vpop.f32.mrb[2].mxu0  ;;  %v1928_v47 = vpop.f32.mrb[1].mxu1 }
 0x127   :  { %v1909_v48 = vpop.f32.mrb[3].mxu0  ;;  %v1929_v2 = vadd.f32 %v1928_v47, %v1927_v44  ;;  %v1930_v49 = vpop.f32.mrb[2].mxu1 }
 0x128   :  { %v1931_v50 = vpop.f32.mrb[3].mxu1 }
 0x129   :  { %v469_v51 = vadd.f32 %v1929_v2, %v1907_v45 }
 0x144   :  { %v1949_v52 = vpop.f32.mrb[4].mxu0 }
 0x145   :  { %v1950_v53 = vpop.f32.mrb[5].mxu0  ;;  %v1971_v54 = vpop.f32.mrb[4].mxu1 }
 0x146   :  { %v1951_v55 = vadd.f32 %v1950_v53, %v1949_v52  ;;  %v1952_v56 = vpop.f32.mrb[6].mxu0  ;;  %v1972_v57 = vpop.f32.mrb[5].mxu1 }
 0x147   :  { %v1953_v58 = vpop.f32.mrb[7].mxu0  ;;  %v1973_v60 = vadd.f32 %v1972_v57, %v1971_v54  ;;  %v1974_v61 = vpop.f32.mrb[6].mxu1 }
 0x148   :  { %v675_v59 = vadd.f32 %v1951_v55, %v469_v51  ;;  %v1975_v62 = vpop.f32.mrb[7].mxu1 }
 0x14a   :  { %v877_v63 = vadd.f32 %v1973_v60, %v675_v59 }
 0x164   :  { %v1993_v0 = vpop.f32.mrb[8].mxu0 }
 0x165   :  { %v1994_v1 = vpop.f32.mrb[9].mxu0  ;;  %v2015_v5 = vpop.f32.mrb[8].mxu1 }
 0x166   :  { %v1995_v3 = vadd.f32 %v1994_v1, %v1993_v0  ;;  %v1996_v4 = vpop.f32.mrb[10].mxu0  ;;  %v2016_v8 = vpop.f32.mrb[9].mxu1 }
 0x167   :  { %v1997_v6 = vpop.f32.mrb[11].mxu0  ;;  %v2017_v9 = vadd.f32 %v2016_v8, %v2015_v5  ;;  %v2018_v32 = vpop.f32.mrb[10].mxu1 }
 0x168   :  { %v1079_v7 = vadd.f32 %v1995_v3, %v877_v63  ;;  %v2019_v10 = vpop.f32.mrb[11].mxu1 }
 0x16a   :  { %v1281_v11 = vadd.f32 %v2017_v9, %v1079_v7 }
 0x184   :  { %v2037_v12 = vpop.f32.mrb[12].mxu0 }
 0x185   :  { %v2038_v33 = vpop.f32.mrb[13].mxu0  ;;  %v2059_v14 = vpop.f32.mrb[12].mxu1 }
 0x186   :  { %v2039_v34 = vadd.f32 %v2038_v33, %v2037_v12  ;;  %v2040_v13 = vpop.f32.mrb[14].mxu0  ;;  %v2060_v17 = vpop.f32.mrb[13].mxu1 }
 0x187   :  { %v2041_v15 = vpop.f32.mrb[15].mxu0  ;;  %v2061_v18 = vadd.f32 %v2060_v17, %v2059_v14  ;;  %v2062_v19 = vpop.f32.mrb[14].mxu1 }
 0x188   :  { %v1483_v16 = vadd.f32 %v2039_v34, %v1281_v11  ;;  %v2063_v20 = vpop.f32.mrb[15].mxu1 }
 0x18a   :  { %v1685_v21 = vadd.f32 %v2061_v18, %v1483_v16 }
 0x18c   :  { %v1687_v22 = vadd.f32 %v1686_v37, %v1685_v21 }
 0x18e   :  { %1688 = vst [vmem:[#allocation9] sm:$0x3] %v1687_v22 }
 0x195   :  { %v1692_v24 = vld [vmem:[#allocation9] sm:$0x3] }
 0x196   :  { %v1700_v25 = vadd.f32 %v1888_v23, %v1692_v24 }
 0x198   :  { %1701 = vst [vmem:[#allocation9] sm:$0x3] %v1700_v25 }
 0x199   :  { %2262 = shalt.err (!%p2259_p8)
}
 0x19a   :  { %s2263_s20 = scalar_lea.hbm %s2471_s5, 32 }
 0x19b   :  { %p2264_p9 = scmp.ne.s32.totalorder %s2471_s5, %s2263_s20  ;;  %p2267_p10 = scmp.lt.u32.totalorder %s2263_s20, %s2471_s5 }
 0x19d   :  { %p2269_p11 = pnand %p2267_p10, %p2264_p9 }
 0x19f   :  { %2272 = shalt.err (!%p2269_p11)
}
 0x1a0   :  { %1711 = dma.vmem_to_hbm [thread:$0]  %s1709_s16, 32, %s2471_s5, [#allocation4]  }
 0x1a1   :  { %2279 = dma.done.wait [#allocation4], 32  }
 0x1a2   :  { %2280 = vsyncadd [#allocation4], 4294967264 }
 0x1a3   :  { %1715 = vsyncpa [#allocation3], 1 }
 0x1a4   :  { %1716 = vsyncpa [#allocation4], 1 }
 0x1a5   :  { %1717 = vsyncpa [#allocation5], 1 }
 0x1a6   :  { %1718 = vsyncpa [#allocation7], 1 }

</bundles_post_ra>
